<compile_context>
chip_gen: v7x
topology: tpu7x:2x2x1
jax: 0.10.0
libtpu: 0.0.40
codegen_flags: <defaults>
</compile_context>

<pallas_src>
import math

import jax
import jax.numpy as jnp
from jax.experimental import pallas as pl
from jax.experimental.pallas import tpu as pltpu

NET_SIZE = 128   # net_size in the PyTorch module
Z_DIM = 32       # z_dim
C_DIM = 1        # c_dim


def _cppn_kernel(z_ref, x_ref, y_ref, r_ref,
                 w1_ref, w2_ref, w3_ref, w4_ref, b1_ref,
                 w5_ref, b5_ref, w6_ref, b6_ref, w7_ref, b7_ref,
                 w8_ref, b8_ref, out_ref):
    # U = linear1(z) + linear2(x) + linear3(y) + linear4(r)
    # linear1 goes to the MXU; the three 1-feature linears are rank-1 VPU adds
    # ((TM,1) * (1,net) outer products), so no feature concat/pad is needed.
    u = jnp.dot(z_ref[...], w1_ref[...], preferred_element_type=jnp.float32)
    u = (u
         + x_ref[...] * w2_ref[...]
         + y_ref[...] * w3_ref[...]
         + r_ref[...] * w4_ref[...]
         + b1_ref[...])

    # lin_seq = tanh -> linear5 -> tanh -> linear6 -> tanh -> linear7 -> tanh
    #           -> linear8 -> sigmoid
    h = jnp.tanh(u)
    h = jnp.tanh(jnp.dot(h, w5_ref[...], preferred_element_type=jnp.float32) + b5_ref[...])
    h = jnp.tanh(jnp.dot(h, w6_ref[...], preferred_element_type=jnp.float32) + b6_ref[...])
    h = jnp.tanh(jnp.dot(h, w7_ref[...], preferred_element_type=jnp.float32) + b7_ref[...])

    # linear8 has a single output channel: VPU multiply + XLU lane reduction
    # (no wasted 128-wide MXU matmul, no 128x-padded output slab).
    o = jnp.sum(h * w8_ref[...], axis=-1, keepdims=True) + b8_ref[...]

    # sigmoid(x) == 0.5 * (tanh(0.5 * x) + 1): single EUP op, no divide.
    out_ref[...] = 0.5 * (jnp.tanh(0.5 * o) + 1.0)


def init_params(key, z_dim=Z_DIM, net_size=NET_SIZE, c_dim=C_DIM):
    """Deterministic params matching the module's __init__: W ~ N(0,1), bias = 0.
    Weights are stored as (in_features, out_features)."""
    ks = jax.random.split(key, 8)
    return dict(
        w1=jax.random.normal(ks[0], (z_dim, net_size), jnp.float32),
        w2=jax.random.normal(ks[1], (1, net_size), jnp.float32),
        w3=jax.random.normal(ks[2], (1, net_size), jnp.float32),
        w4=jax.random.normal(ks[3], (1, net_size), jnp.float32),
        b1=jnp.zeros((net_size,), jnp.float32),
        w5=jax.random.normal(ks[4], (net_size, net_size), jnp.float32),
        b5=jnp.zeros((net_size,), jnp.float32),
        w6=jax.random.normal(ks[5], (net_size, net_size), jnp.float32),
        b6=jnp.zeros((net_size,), jnp.float32),
        w7=jax.random.normal(ks[6], (net_size, net_size), jnp.float32),
        b7=jnp.zeros((net_size,), jnp.float32),
        w8=jax.random.normal(ks[7], (net_size, c_dim), jnp.float32),
        b8=jnp.zeros((c_dim,), jnp.float32),
    )


def _choose_tm(m):
    """Largest row tile in {2048, 1024, 512, 256, 128} that keeps >= 2 grid
    steps (so the 'parallel' axis can split across both v7x TensorCores).
    Bigger tiles amortize the ~0.35 us per-grid-step overhead; activations at
    tm=2048 are ~1 MiB f32, well within VMEM even double-buffered."""
    for tm in (2048, 1024, 512, 256, 128):
        if m >= 2 * tm:
            return tm
    return 128


def dc_generator_forward(params, x, y, r, z):
    """x, y, r: (B, N, 1) float32; z: (B, N, z_dim) float32.
    Returns (B, 1, sqrt(N), sqrt(N)) float32 (NCHW), matching the PyTorch module."""
    B, N, _ = x.shape
    z_dim = z.shape[-1]
    net = params["w5"].shape[0]
    M = B * N

    tm = _choose_tm(M)
    grid = pl.cdiv(M, tm)
    m_pad = grid * tm

    # Metadata-only reshapes (no HBM pass); pad only the ragged tail rows.
    z2 = z.reshape(M, z_dim)
    x2 = x.reshape(M, 1)
    y2 = y.reshape(M, 1)
    r2 = r.reshape(M, 1)
    if m_pad != M:
        pad = ((0, m_pad - M), (0, 0))
        z2 = jnp.pad(z2, pad)
        x2 = jnp.pad(x2, pad)
        y2 = jnp.pad(y2, pad)
        r2 = jnp.pad(r2, pad)

    row = lambda p: p.reshape(1, -1)
    w8_row = params["w8"].reshape(1, net)   # (net, 1) column -> (1, net) row
    b8 = params["b8"].reshape(1, 1)

    full = lambda shape: pl.BlockSpec(shape, lambda i: (0, 0))   # weights: resident
    tile = lambda c: pl.BlockSpec((tm, c), lambda i: (i, 0))     # per-row inputs

    out = pl.pallas_call(
        _cppn_kernel,
        out_shape=jax.ShapeDtypeStruct((m_pad, 1), jnp.float32),
        grid_spec=pltpu.PrefetchScalarGridSpec(
            num_scalar_prefetch=0,
            grid=(grid,),
            in_specs=[
                tile(z_dim), tile(1), tile(1), tile(1),          # z, x, y, r
                full((z_dim, net)),                              # W1
                full((1, net)), full((1, net)), full((1, net)),  # W2, W3, W4 rows
                full((1, net)),                                  # b1
                full((net, net)), full((1, net)),                # W5, b5
                full((net, net)), full((1, net)),                # W6, b6
                full((net, net)), full((1, net)),                # W7, b7
                full((1, net)), full((1, 1)),                    # W8 row, b8
            ],
            out_specs=pl.BlockSpec((tm, 1), lambda i: (i, 0)),
        ),
        compiler_params=pltpu.CompilerParams(
            dimension_semantics=("parallel",)),
    )(z2, x2, y2, r2,
      params["w1"], row(params["w2"]), row(params["w3"]), row(params["w4"]),
      row(params["b1"]),
      params["w5"], row(params["b5"]),
      params["w6"], row(params["b6"]),
      params["w7"], row(params["b7"]),
      w8_row, b8)

    side = round(math.sqrt(N))
    result = out[:M, 0].reshape(B, N)              # .squeeze(2)
    return result.reshape(B, side, side)[:, None]  # .view(B, side, side).unsqueeze(1)


def reference_forward(params, x, y, r, z):
    """Pure-JAX reference of the PyTorch forward, for a correctness check."""
    U = (z @ params["w1"] + params["b1"]
         + x @ params["w2"] + y @ params["w3"] + r @ params["w4"])
    h = jnp.tanh(U)
    h = jnp.tanh(h @ params["w5"] + params["b5"])
    h = jnp.tanh(h @ params["w6"] + params["b6"])
    h = jnp.tanh(h @ params["w7"] + params["b7"])
    o = jax.nn.sigmoid(h @ params["w8"] + params["b8"])
    B, N, _ = x.shape
    side = round(math.sqrt(N))
    return o[..., 0].reshape(B, side, side)[:, None]


if __name__ == "__main__":
    key = jax.random.PRNGKey(0)
    k_p, k_x, k_y, k_r, k_z = jax.random.split(key, 5)

    # x_dim = y_dim = 16 -> n_points N = 256 (a perfect square, as the forward requires)
    B, x_dim, y_dim = 2, 16, 16
    N = x_dim * y_dim

    params = init_params(k_p)
    x = jax.random.normal(k_x, (B, N, 1), jnp.float32)
    y = jax.random.normal(k_y, (B, N, 1), jnp.float32)
    r = jax.random.normal(k_r, (B, N, 1), jnp.float32)
    z = jax.random.normal(k_z, (B, N, Z_DIM), jnp.float32)

    out = dc_generator_forward(params, x, y, r, z)
    out = jax.block_until_ready(out)

    ref = reference_forward(params, x, y, r, z)
    assert out.shape == (B, 1, x_dim, y_dim), out.shape
    assert jnp.allclose(out, ref, atol=1e-5, rtol=1e-5), "mismatch vs JAX reference"

    print("KERNEL_OK")
</pallas_src>

<mosaic_0001>
module attributes {stable_mosaic.version = 11 : i64} {
  func.func @_cppn_kernel(%arg0: i32, %arg1: memref<256x32xf32, #tpu.memory_space<vmem>>, %arg2: memref<256x1xf32, #tpu.memory_space<vmem>>, %arg3: memref<256x1xf32, #tpu.memory_space<vmem>>, %arg4: memref<256x1xf32, #tpu.memory_space<vmem>>, %arg5: memref<32x128xf32, #tpu.memory_space<vmem>>, %arg6: memref<1x128xf32, #tpu.memory_space<vmem>>, %arg7: memref<1x128xf32, #tpu.memory_space<vmem>>, %arg8: memref<1x128xf32, #tpu.memory_space<vmem>>, %arg9: memref<1x128xf32, #tpu.memory_space<vmem>>, %arg10: memref<128x128xf32, #tpu.memory_space<vmem>>, %arg11: memref<1x128xf32, #tpu.memory_space<vmem>>, %arg12: memref<128x128xf32, #tpu.memory_space<vmem>>, %arg13: memref<1x128xf32, #tpu.memory_space<vmem>>, %arg14: memref<128x128xf32, #tpu.memory_space<vmem>>, %arg15: memref<1x128xf32, #tpu.memory_space<vmem>>, %arg16: memref<1x128xf32, #tpu.memory_space<vmem>>, %arg17: memref<1x1xf32, #tpu.memory_space<vmem>>, %arg18: memref<256x1xf32, #tpu.memory_space<vmem>>) attributes {dimension_semantics = [#tpu.dimension_semantics<parallel>], iteration_bounds = array<i64: 2>, scalar_prefetch = 0 : i64, scratch_operands = 0 : i64, tpu.core_type = #tpu.core_type<tc>, window_params = [{transform_indices = @transform_0, window_bounds = array<i64: 256, 32>}, {transform_indices = @transform_1, window_bounds = array<i64: 256, 1>}, {transform_indices = @transform_2, window_bounds = array<i64: 256, 1>}, {transform_indices = @transform_3, window_bounds = array<i64: 256, 1>}, {pipeline_mode = #tpu.pipeline_mode<synchronous>, transform_indices = @transform_4, window_bounds = array<i64: 32, 128>}, {pipeline_mode = #tpu.pipeline_mode<synchronous>, transform_indices = @transform_5, window_bounds = array<i64: 1, 128>}, {pipeline_mode = #tpu.pipeline_mode<synchronous>, transform_indices = @transform_6, window_bounds = array<i64: 1, 128>}, {pipeline_mode = #tpu.pipeline_mode<synchronous>, transform_indices = @transform_7, window_bounds = array<i64: 1, 128>}, {pipeline_mode = #tpu.pipeline_mode<synchronous>, transform_indices = @transform_8, window_bounds = array<i64: 1, 128>}, {pipeline_mode = #tpu.pipeline_mode<synchronous>, transform_indices = @transform_9, window_bounds = array<i64: 128, 128>}, {pipeline_mode = #tpu.pipeline_mode<synchronous>, transform_indices = @transform_10, window_bounds = array<i64: 1, 128>}, {pipeline_mode = #tpu.pipeline_mode<synchronous>, transform_indices = @transform_11, window_bounds = array<i64: 128, 128>}, {pipeline_mode = #tpu.pipeline_mode<synchronous>, transform_indices = @transform_12, window_bounds = array<i64: 1, 128>}, {pipeline_mode = #tpu.pipeline_mode<synchronous>, transform_indices = @transform_13, window_bounds = array<i64: 128, 128>}, {pipeline_mode = #tpu.pipeline_mode<synchronous>, transform_indices = @transform_14, window_bounds = array<i64: 1, 128>}, {pipeline_mode = #tpu.pipeline_mode<synchronous>, transform_indices = @transform_15, window_bounds = array<i64: 1, 128>}, {pipeline_mode = #tpu.pipeline_mode<synchronous>, transform_indices = @transform_16, window_bounds = array<i64: 1, 1>}, {transform_indices = @transform_17, window_bounds = array<i64: 256, 1>}]} {
    %c0 = arith.constant 0 : index
    %c0_0 = arith.constant 0 : index
    %0 = vector.load %arg1[%c0, %c0_0] : memref<256x32xf32, #tpu.memory_space<vmem>>, vector<256x32xf32>
    %c0_1 = arith.constant 0 : index
    %c0_2 = arith.constant 0 : index
    %1 = vector.load %arg5[%c0_1, %c0_2] : memref<32x128xf32, #tpu.memory_space<vmem>>, vector<32x128xf32>
    %cst = arith.constant dense<0.000000e+00> : vector<256x128xf32>
    %2 = tpu.matmul %0, %1, %cst {dimension_numbers = #tpu.dot_dimension_numbers<[1], [0], [0], [1], [0, 0, 1, 1], [], []>} : vector<256x32xf32>, vector<32x128xf32>, vector<256x128xf32> -> vector<256x128xf32>
    %c0_3 = arith.constant 0 : index
    %c0_4 = arith.constant 0 : index
    %3 = vector.load %arg2[%c0_3, %c0_4] : memref<256x1xf32, #tpu.memory_space<vmem>>, vector<256x1xf32>
    %c0_5 = arith.constant 0 : index
    %c0_6 = arith.constant 0 : index
    %4 = vector.load %arg6[%c0_5, %c0_6] : memref<1x128xf32, #tpu.memory_space<vmem>>, vector<1x128xf32>
    %5 = vector.broadcast %3 : vector<256x1xf32> to vector<256x128xf32>
    %6 = vector.broadcast %4 : vector<1x128xf32> to vector<256x128xf32>
    %7 = arith.mulf %5, %6 : vector<256x128xf32>
    %8 = arith.addf %2, %7 : vector<256x128xf32>
    %c0_7 = arith.constant 0 : index
    %c0_8 = arith.constant 0 : index
    %9 = vector.load %arg3[%c0_7, %c0_8] : memref<256x1xf32, #tpu.memory_space<vmem>>, vector<256x1xf32>
    %c0_9 = arith.constant 0 : index
    %c0_10 = arith.constant 0 : index
    %10 = vector.load %arg7[%c0_9, %c0_10] : memref<1x128xf32, #tpu.memory_space<vmem>>, vector<1x128xf32>
    %11 = vector.broadcast %9 : vector<256x1xf32> to vector<256x128xf32>
    %12 = vector.broadcast %10 : vector<1x128xf32> to vector<256x128xf32>
    %13 = arith.mulf %11, %12 : vector<256x128xf32>
    %14 = arith.addf %8, %13 : vector<256x128xf32>
    %c0_11 = arith.constant 0 : index
    %c0_12 = arith.constant 0 : index
    %15 = vector.load %arg4[%c0_11, %c0_12] : memref<256x1xf32, #tpu.memory_space<vmem>>, vector<256x1xf32>
    %c0_13 = arith.constant 0 : index
    %c0_14 = arith.constant 0 : index
    %16 = vector.load %arg8[%c0_13, %c0_14] : memref<1x128xf32, #tpu.memory_space<vmem>>, vector<1x128xf32>
    %17 = vector.broadcast %15 : vector<256x1xf32> to vector<256x128xf32>
    %18 = vector.broadcast %16 : vector<1x128xf32> to vector<256x128xf32>
    %19 = arith.mulf %17, %18 : vector<256x128xf32>
    %20 = arith.addf %14, %19 : vector<256x128xf32>
    %c0_15 = arith.constant 0 : index
    %c0_16 = arith.constant 0 : index
    %21 = vector.load %arg9[%c0_15, %c0_16] : memref<1x128xf32, #tpu.memory_space<vmem>>, vector<1x128xf32>
    %22 = vector.broadcast %21 : vector<1x128xf32> to vector<256x128xf32>
    %23 = arith.addf %20, %22 : vector<256x128xf32>
    %24 = math.tanh %23 : vector<256x128xf32>
    %c0_17 = arith.constant 0 : index
    %c0_18 = arith.constant 0 : index
    %25 = vector.load %arg10[%c0_17, %c0_18] : memref<128x128xf32, #tpu.memory_space<vmem>>, vector<128x128xf32>
    %cst_19 = arith.constant dense<0.000000e+00> : vector<256x128xf32>
    %26 = tpu.matmul %24, %25, %cst_19 {dimension_numbers = #tpu.dot_dimension_numbers<[1], [0], [0], [1], [0, 0, 1, 1], [], []>} : vector<256x128xf32>, vector<128x128xf32>, vector<256x128xf32> -> vector<256x128xf32>
    %c0_20 = arith.constant 0 : index
    %c0_21 = arith.constant 0 : index
    %27 = vector.load %arg11[%c0_20, %c0_21] : memref<1x128xf32, #tpu.memory_space<vmem>>, vector<1x128xf32>
    %28 = vector.broadcast %27 : vector<1x128xf32> to vector<256x128xf32>
    %29 = arith.addf %26, %28 : vector<256x128xf32>
    %30 = math.tanh %29 : vector<256x128xf32>
    %c0_22 = arith.constant 0 : index
    %c0_23 = arith.constant 0 : index
    %31 = vector.load %arg12[%c0_22, %c0_23] : memref<128x128xf32, #tpu.memory_space<vmem>>, vector<128x128xf32>
    %cst_24 = arith.constant dense<0.000000e+00> : vector<256x128xf32>
    %32 = tpu.matmul %30, %31, %cst_24 {dimension_numbers = #tpu.dot_dimension_numbers<[1], [0], [0], [1], [0, 0, 1, 1], [], []>} : vector<256x128xf32>, vector<128x128xf32>, vector<256x128xf32> -> vector<256x128xf32>
    %c0_25 = arith.constant 0 : index
    %c0_26 = arith.constant 0 : index
    %33 = vector.load %arg13[%c0_25, %c0_26] : memref<1x128xf32, #tpu.memory_space<vmem>>, vector<1x128xf32>
    %34 = vector.broadcast %33 : vector<1x128xf32> to vector<256x128xf32>
    %35 = arith.addf %32, %34 : vector<256x128xf32>
    %36 = math.tanh %35 : vector<256x128xf32>
    %c0_27 = arith.constant 0 : index
    %c0_28 = arith.constant 0 : index
    %37 = vector.load %arg14[%c0_27, %c0_28] : memref<128x128xf32, #tpu.memory_space<vmem>>, vector<128x128xf32>
    %cst_29 = arith.constant dense<0.000000e+00> : vector<256x128xf32>
    %38 = tpu.matmul %36, %37, %cst_29 {dimension_numbers = #tpu.dot_dimension_numbers<[1], [0], [0], [1], [0, 0, 1, 1], [], []>} : vector<256x128xf32>, vector<128x128xf32>, vector<256x128xf32> -> vector<256x128xf32>
    %c0_30 = arith.constant 0 : index
    %c0_31 = arith.constant 0 : index
    %39 = vector.load %arg15[%c0_30, %c0_31] : memref<1x128xf32, #tpu.memory_space<vmem>>, vector<1x128xf32>
    %40 = vector.broadcast %39 : vector<1x128xf32> to vector<256x128xf32>
    %41 = arith.addf %38, %40 : vector<256x128xf32>
    %42 = math.tanh %41 : vector<256x128xf32>
    %c0_32 = arith.constant 0 : index
    %c0_33 = arith.constant 0 : index
    %43 = vector.load %arg16[%c0_32, %c0_33] : memref<1x128xf32, #tpu.memory_space<vmem>>, vector<1x128xf32>
    %44 = vector.broadcast %43 : vector<1x128xf32> to vector<256x128xf32>
    %45 = arith.mulf %42, %44 : vector<256x128xf32>
    %cst_34 = arith.constant dense<0.000000e+00> : vector<256xf32>
    %46 = vector.multi_reduction <add>, %45, %cst_34 [1] : vector<256x128xf32> to vector<256xf32>
    %47 = vector.shape_cast %46 : vector<256xf32> to vector<256x1xf32>
    %c0_35 = arith.constant 0 : index
    %c0_36 = arith.constant 0 : index
    %48 = vector.load %arg17[%c0_35, %c0_36] : memref<1x1xf32, #tpu.memory_space<vmem>>, vector<1x1xf32>
    %49 = vector.broadcast %48 : vector<1x1xf32> to vector<256x1xf32>
    %50 = arith.addf %47, %49 : vector<256x1xf32>
    %cst_37 = arith.constant 5.000000e-01 : f32
    %51 = vector.broadcast %cst_37 : f32 to vector<256x1xf32>
    %52 = arith.mulf %51, %50 : vector<256x1xf32>
    %53 = math.tanh %52 : vector<256x1xf32>
    %cst_38 = arith.constant 1.000000e+00 : f32
    %54 = vector.broadcast %cst_38 : f32 to vector<256x1xf32>
    %55 = arith.addf %53, %54 : vector<256x1xf32>
    %cst_39 = arith.constant 5.000000e-01 : f32
    %56 = vector.broadcast %cst_39 : f32 to vector<256x1xf32>
    %57 = arith.mulf %56, %55 : vector<256x1xf32>
    %c0_40 = arith.constant 0 : index
    %c0_41 = arith.constant 0 : index
    %58 = vector.load %arg18[%c0_40, %c0_41] : memref<256x1xf32, #tpu.memory_space<vmem>>, vector<256x1xf32>
    tpu.vector_store %arg18[%c0_40, %c0_41], %57 {strides = array<i32>} : memref<256x1xf32, #tpu.memory_space<vmem>>, vector<256x1xf32>,
    return
  }
  func.func @transform_0(%arg0: i32) -> (i32, i32) {
    %c0_i32 = arith.constant 0 : i32
    %c0_i32_0 = arith.constant 0 : i32
    return %arg0, %c0_i32 : i32, i32
  }
  func.func @transform_1(%arg0: i32) -> (i32, i32) {
    %c0_i32 = arith.constant 0 : i32
    %c0_i32_0 = arith.constant 0 : i32
    return %arg0, %c0_i32 : i32, i32
  }
  func.func @transform_2(%arg0: i32) -> (i32, i32) {
    %c0_i32 = arith.constant 0 : i32
    %c0_i32_0 = arith.constant 0 : i32
    return %arg0, %c0_i32 : i32, i32
  }
  func.func @transform_3(%arg0: i32) -> (i32, i32) {
    %c0_i32 = arith.constant 0 : i32
    %c0_i32_0 = arith.constant 0 : i32
    return %arg0, %c0_i32 : i32, i32
  }
  func.func @transform_4(%arg0: i32) -> (i32, i32) {
    %c0_i32 = arith.constant 0 : i32
    %c0_i32_0 = arith.constant 0 : i32
    %c0_i32_1 = arith.constant 0 : i32
    return %c0_i32, %c0_i32_0 : i32, i32
  }
  func.func @transform_5(%arg0: i32) -> (i32, i32) {
    %c0_i32 = arith.constant 0 : i32
    %c0_i32_0 = arith.constant 0 : i32
    %c0_i32_1 = arith.constant 0 : i32
    return %c0_i32, %c0_i32_0 : i32, i32
  }
  func.func @transform_6(%arg0: i32) -> (i32, i32) {
    %c0_i32 = arith.constant 0 : i32
    %c0_i32_0 = arith.constant 0 : i32
    %c0_i32_1 = arith.constant 0 : i32
    return %c0_i32, %c0_i32_0 : i32, i32
  }
  func.func @transform_7(%arg0: i32) -> (i32, i32) {
    %c0_i32 = arith.constant 0 : i32
    %c0_i32_0 = arith.constant 0 : i32
    %c0_i32_1 = arith.constant 0 : i32
    return %c0_i32, %c0_i32_0 : i32, i32
  }
  func.func @transform_8(%arg0: i32) -> (i32, i32) {
    %c0_i32 = arith.constant 0 : i32
    %c0_i32_0 = arith.constant 0 : i32
    %c0_i32_1 = arith.constant 0 : i32
    return %c0_i32, %c0_i32_0 : i32, i32
  }
  func.func @transform_9(%arg0: i32) -> (i32, i32) {
    %c0_i32 = arith.constant 0 : i32
    %c0_i32_0 = arith.constant 0 : i32
    %c0_i32_1 = arith.constant 0 : i32
    return %c0_i32, %c0_i32_0 : i32, i32
  }
  func.func @transform_10(%arg0: i32) -> (i32, i32) {
    %c0_i32 = arith.constant 0 : i32
    %c0_i32_0 = arith.constant 0 : i32
    %c0_i32_1 = arith.constant 0 : i32
    return %c0_i32, %c0_i32_0 : i32, i32
  }
  func.func @transform_11(%arg0: i32) -> (i32, i32) {
    %c0_i32 = arith.constant 0 : i32
    %c0_i32_0 = arith.constant 0 : i32
    %c0_i32_1 = arith.constant 0 : i32
    return %c0_i32, %c0_i32_0 : i32, i32
  }
  func.func @transform_12(%arg0: i32) -> (i32, i32) {
    %c0_i32 = arith.constant 0 : i32
    %c0_i32_0 = arith.constant 0 : i32
    %c0_i32_1 = arith.constant 0 : i32
    return %c0_i32, %c0_i32_0 : i32, i32
  }
  func.func @transform_13(%arg0: i32) -> (i32, i32) {
    %c0_i32 = arith.constant 0 : i32
    %c0_i32_0 = arith.constant 0 : i32
    %c0_i32_1 = arith.constant 0 : i32
    return %c0_i32, %c0_i32_0 : i32, i32
  }
  func.func @transform_14(%arg0: i32) -> (i32, i32) {
    %c0_i32 = arith.constant 0 : i32
    %c0_i32_0 = arith.constant 0 : i32
    %c0_i32_1 = arith.constant 0 : i32
    return %c0_i32, %c0_i32_0 : i32, i32
  }
  func.func @transform_15(%arg0: i32) -> (i32, i32) {
    %c0_i32 = arith.constant 0 : i32
    %c0_i32_0 = arith.constant 0 : i32
    %c0_i32_1 = arith.constant 0 : i32
    return %c0_i32, %c0_i32_0 : i32, i32
  }
  func.func @transform_16(%arg0: i32) -> (i32, i32) {
    %c0_i32 = arith.constant 0 : i32
    %c0_i32_0 = arith.constant 0 : i32
    %c0_i32_1 = arith.constant 0 : i32
    return %c0_i32, %c0_i32_0 : i32, i32
  }
  func.func @transform_17(%arg0: i32) -> (i32, i32) {
    %c0_i32 = arith.constant 0 : i32
    %c0_i32_0 = arith.constant 0 : i32
    return %arg0, %c0_i32 : i32, i32
  }
}

</mosaic_0001>

<bundles_post_ra>
// kernel: tpu_custom_call.1
= control target key start
LH: loop header
LB: loop body
LE: loop exit
PB: predicated region body
PF: predicated region fallthrough
CT: control target
= control target key end

     0   :  { %s4128_s26 = smov 0   ;;  %s5082_s0 = inlined_call_operand.vmem [shape: f32[512,32], index: 0, kind: input, shape index: {}]   ;;  %s5083_s1 = inlined_call_operand.vmem [shape: f32[512,1], index: 1, kind: input, shape index: {}]   ;;  %s5084_s2 = inlined_call_operand.vmem [shape: f32[512,1], index: 2, kind: input, shape index: {}]   ;;  %s5085_s3 = inlined_call_operand.vmem [shape: f32[512,1], index: 3, kind: input, shape index: {}]   ;;  %s5086_s4 = inlined_call_operand.vmem [shape: f32[32,128], index: 4, kind: input, shape index: {}]   ;;  %s5087_s5 = inlined_call_operand.vmem [shape: f32[1,128], index: 5, kind: input, shape index: {}]   ;;  %s5088_s6 = inlined_call_operand.vmem [shape: f32[1,128], index: 6, kind: input, shape index: {}]   ;;  %s5089_s7 = inlined_call_operand.vmem [shape: f32[1,128], index: 7, kind: input, shape index: {}]   ;;  %s5090_s8 = inlined_call_operand.vmem [shape: f32[1,128], index: 8, kind: input, shape index: {}]   ;;  %s5091_s9 = inlined_call_operand.vmem [shape: f32[128,128], index: 9, kind: input, shape index: {}]   ;;  %s5092_s10 = inlined_call_operand.vmem [shape: f32[1,128], index: 10, kind: input, shape index: {}]   ;;  %s5093_s11 = inlined_call_operand.vmem [shape: f32[128,128], index: 11, kind: input, shape index: {}]   ;;  %s5094_s12 = inlined_call_operand.vmem [shape: f32[1,128], index: 12, kind: input, shape index: {}]   ;;  %s5095_s13 = inlined_call_operand.vmem [shape: f32[128,128], index: 13, kind: input, shape index: {}]   ;;  %s5096_s14 = inlined_call_operand.vmem [shape: f32[1,128], index: 14, kind: input, shape index: {}]   ;;  %s5097_s15 = inlined_call_operand.vmem [shape: f32[1,128], index: 15, kind: input, shape index: {}]   ;;  %s5098_s16 = inlined_call_operand.<no memory space> [shape: f32[1,1], index: 16, kind: input, shape index: {}]   ;;  %s5099_s17 = inlined_call_operand.vmem [shape: f32[512,1], index: 17, kind: output, shape index: {}]  }
   0x1   :  { %5100 = sst [smem:[#allocation3_spill]] %s5082_s0  ;;  %v22_v0 = vstv %s5098_s16 }
   0x2   :  { %5101 = sst [smem:[#allocation4_spill]] %s5083_s1  ;;  %23 = vst [vmem:[#allocation2] sm:$0x1] %v22_v0 }
   0x3 LB: > { %s3041_s27 = sadd.s32 4294967295, %s4032_s26   ;;  %p3045_p0 = scmp.ge.s32.totalorder %s4032_s26, 1  ;;  %s4032_s26 = sphi %s4128_s26, %s29_s26  }
   0x4   : > { %p523_p1 = scmp.lt.s32.totalorder %s4032_s26, 3 }
   0x6   : > { %p524_p2 = pnand %p3045_p0, %p523_p1 }
   0x7   : > { %v652_v1 = vld [vmem:[%s5086_s4] sm:$0xff] (!%p524_p2)  ;;  %v653_v2 = vld [vmem:[%s5086_s4 + $0x8] sm:$0xff] (!%p524_p2)  ;;  %v654_v3 = vld [vmem:[%s5086_s4 + $0x10] sm:$0xff] (!%p524_p2)  ;;  %s3046_s19 = sshll.u32 (!%p524_p2), %s3041_s27, 5  ;;  %v4034_v5 = vmov (!%p524_p2), 0   ;;  %s5102_s28 = sld [smem:[#allocation4_spill]] (!%p524_p2) }
   0x8   : > { %527 = sbr.rel (%p524_p2) target bundleno = 1199 (0x4af), region = 88  ;;  %v3575_v4 = vpack.c.bf16 (!%p524_p2), %v653_v2, %v652_v1  ;;  %3705 = vset.pattern.permute.xlu1 (!%p524_p2), %v4034_v5  ;;  %3704 = vset.pattern.permute.xlu0 (!%p524_p2), %v4034_v5  ;;  %v655_v6 = vld [vmem:[%s5086_s4 + $0x18] sm:$0xff] (!%p524_p2)  ;;  %p591_p3 = scmp.lt.s32.totalorder (!%p524_p2), %s3046_s19, 63  ;;  %vm887_vm0 = vcmask (!%p524_p2), 261120   ;;  %vm2916_vm1 = vcmask (!%p524_p2), 7168  }
   0x9   : > { %v3579_v7 = vpack.c.bf16 (!%p524_p2), %v655_v6, %v654_v3  ;;  %s5103_s30 = sld [smem:[#allocation3_spill]] (!%p524_p2) }
   0xa   : > { %3576 = vmatprep.subr.bf16.mxu0 (!%p524_p2), %v3575_v4 }
   0xb   : > { %3578 = vmatpush3.bf16.msra.mxu0 (!%p524_p2), %v3575_v4 }
   0xc   : > { %3580 = vmatprep.subr.bf16.mxu0 (!%p524_p2), %v3579_v7 }
   0xf   : > { %s5105_s19 = smov (!%p591_p3, %s3046_s19), 63  ;;  %3582 = vmatpush3.bf16.msra.mxu0 %v3579_v7 }
  0x10   : > { %s4148_s21 = sshll.u32 %s5105_s19, 3 }
  0x11   : > { %s4154_s24 = scalar_lea.vmem %s5084_s2, %s4148_s21  ;;  %s4160_s29 = scalar_lea.vmem %s5102_s28, %s4148_s21 }
  0x12   : > { %v1209_v8 = vld [vmem:[%s4154_s24] sm:$0xff]  ;;  %s4168_s18 = scalar_lea.vmem %s5103_s30, %s4148_s21  ;;  %v1210_v12 = vld [vmem:[%s4154_s24 + $0x8] sm:$0xff]  ;;  %s4180_s20 = scalar_lea.vmem %s5085_s3, %s4148_s21  ;;  %v658_v18 = vld [vmem:[%s4160_s29 + $0x10] sm:$0xff] }
  0x13   : > { %v656_v9 = vld [vmem:[%s4160_s29] sm:$0xff]  ;;  %1244 = vperm.xlu1 %3705, %v1209_v8   ;;  %v621_v11 = vld [vmem:[%s4168_s18 + $0x8] sm:$0xff]  ;;  %v622_v13 = vld [vmem:[%s4168_s18 + $0x10] sm:$0xff] }
  0x14   : > { %v620_v10 = vld [vmem:[%s4168_s18] sm:$0xff]  ;;  %691 = vperm.xlu0 %3704, %v656_v9   ;;  %v657_v14 = vld [vmem:[%s4160_s29 + $0x8] sm:$0xff]  ;;  %v623_v15 = vld [vmem:[%s4168_s18 + $0x18] sm:$0xff] }
  0x15   : > { %3287 = vmatprep.mubr.msk.f32.mxu0 %vm887_vm0, %v620_v10  ;;  %v1472_v16 = vld [vmem:[%s4180_s20] sm:$0xff]  ;;  %v625_v19 = vld [vmem:[%s4168_s18 + $0x28] sm:$0xff]  ;;  %v626_v21 = vld [vmem:[%s4168_s18 + $0x30] sm:$0xff] }
  0x16   : > { %3288 = vmatmul.mubr.msk.f32.vlgmr.msra.gmra.mrb[0].mxu0 %vm887_vm0, %v621_v11  ;;  %v624_v17 = vld [vmem:[%s4168_s18 + $0x20] sm:$0xff]  ;;  %v1473_v20 = vld [vmem:[%s4180_s20 + $0x8] sm:$0xff]  ;;  %v659_v22 = vld [vmem:[%s4160_s29 + $0x18] sm:$0xff] }
  0x17   : > { %1249 = vperm.xlu1 %3705, %v1210_v12   ;;  %3290 = vmatprep.mubr.msk.f32.mxu0 %vm887_vm0, %v622_v13  ;;  %v627_v23 = vld [vmem:[%s4168_s18 + $0x38] sm:$0xff]  ;;  %v628_v25 = vld [vmem:[%s4168_s18 + $0x40] sm:$0xff]  ;;  %v1211_v26 = vld [vmem:[%s4154_s24 + $0x10] sm:$0xff] }
  0x18   : > { %696 = vperm.xlu0 %3704, %v657_v14   ;;  %v1212_v24 = vld [vmem:[%s4154_s24 + $0x18] sm:$0xff]  ;;  %v629_v27 = vld [vmem:[%s4168_s18 + $0x48] sm:$0xff]  ;;  %v1474_v28 = vld [vmem:[%s4180_s20 + $0x10] sm:$0xff] }
  0x19   : > { %v630_v29 = vld [vmem:[%s4168_s18 + $0x50] sm:$0xff]  ;;  %v660_v30 = vld [vmem:[%s4160_s29 + $0x20] sm:$0xff]  ;;  %v631_v31 = vld [vmem:[%s4168_s18 + $0x58] sm:$0xff] }
  0x1a   : > { %3291 = vmatmul.mubr.msk.f32.gmra.mrb[2].mxu0 %vm887_vm0, %v623_v15  ;;  %v1475_v32 = vld [vmem:[%s4180_s20 + $0x18] sm:$0xff]  ;;  %v632_v33 = vld [vmem:[%s4168_s18 + $0x60] sm:$0xff]  ;;  %v661_v34 = vld [vmem:[%s4160_s29 + $0x28] sm:$0xff] }
  0x1b   : > { %1507 = vperm.xlu1 %3705, %v1472_v16   ;;  %3293 = vmatprep.mubr.msk.f32.mxu0 %vm887_vm0, %v624_v17  ;;  %v633_v35 = vld [vmem:[%s4168_s18 + $0x68] sm:$0xff]  ;;  %v634_v37 = vld [vmem:[%s4168_s18 + $0x70] sm:$0xff]  ;;  %v1213_v38 = vld [vmem:[%s4154_s24 + $0x20] sm:$0xff] }
  0x1c   : > { %701 = vperm.xlu0 %3704, %v658_v18   ;;  %v1214_v36 = vld [vmem:[%s4154_s24 + $0x28] sm:$0xff]  ;;  %v635_v39 = vld [vmem:[%s4168_s18 + $0x78] sm:$0xff]  ;;  %v1476_v40 = vld [vmem:[%s4180_s20 + $0x20] sm:$0xff] }
  0x1d   : > { %v636_v41 = vld [vmem:[%s4168_s18 + $0x80] sm:$0xff]  ;;  %v662_v42 = vld [vmem:[%s4160_s29 + $0x30] sm:$0xff]  ;;  %v637_v43 = vld [vmem:[%s4168_s18 + $0x88] sm:$0xff] }
  0x1e   : > { %3294 = vmatmul.mubr.msk.f32.gmra.mrb[4].mxu0 %vm887_vm0, %v625_v19  ;;  %v1477_v44 = vld [vmem:[%s4180_s20 + $0x28] sm:$0xff]  ;;  %v638_v45 = vld [vmem:[%s4168_s18 + $0x90] sm:$0xff]  ;;  %v663_v46 = vld [vmem:[%s4160_s29 + $0x38] sm:$0xff] }
  0x1f   : > { %1512 = vperm.xlu1 %3705, %v1473_v20   ;;  %3296 = vmatprep.mubr.msk.f32.mxu0 %vm887_vm0, %v626_v21  ;;  %v639_v47 = vld [vmem:[%s4168_s18 + $0x98] sm:$0xff]  ;;  %v640_v49 = vld [vmem:[%s4168_s18 + $0xa0] sm:$0xff]  ;;  %v1215_v50 = vld [vmem:[%s4154_s24 + $0x30] sm:$0xff] }
  0x20   : > { %706 = vperm.xlu0 %3704, %v659_v22   ;;  %v1216_v48 = vld [vmem:[%s4154_s24 + $0x38] sm:$0xff]  ;;  %v641_v51 = vld [vmem:[%s4168_s18 + $0xa8] sm:$0xff]  ;;  %v1478_v52 = vld [vmem:[%s4180_s20 + $0x30] sm:$0xff] }
  0x21   : > { %v642_v53 = vld [vmem:[%s4168_s18 + $0xb0] sm:$0xff]  ;;  %v664_v54 = vld [vmem:[%s4160_s29 + $0x40] sm:$0xff]  ;;  %v643_v55 = vld [vmem:[%s4168_s18 + $0xb8] sm:$0xff] }
  0x22   : > { %3297 = vmatmul.mubr.msk.f32.gmra.mrb[6].mxu0 %vm887_vm0, %v627_v23  ;;  %v1479_v56 = vld [vmem:[%s4180_s20 + $0x38] sm:$0xff]  ;;  %v644_v57 = vld [vmem:[%s4168_s18 + $0xc0] sm:$0xff]  ;;  %v665_v58 = vld [vmem:[%s4160_s29 + $0x48] sm:$0xff] }
  0x23   : > { %1259 = vperm.xlu1 %3705, %v1212_v24   ;;  %3299 = vmatprep.mubr.msk.f32.mxu0 %vm887_vm0, %v628_v25  ;;  %v645_v59 = vld [vmem:[%s4168_s18 + $0xc8] sm:$0xff]  ;;  %v646_v61 = vld [vmem:[%s4168_s18 + $0xd0] sm:$0xff]  ;;  %v1217_v62 = vld [vmem:[%s4154_s24 + $0x40] sm:$0xff] }
  0x24   : > { %1254 = vperm.xlu0 %3704, %v1211_v26   ;;  %v1218_v60 = vld [vmem:[%s4154_s24 + $0x48] sm:$0xff]  ;;  %v647_v63 = vld [vmem:[%s4168_s18 + $0xd8] sm:$0xff]  ;;  %v1480_v0 = vld [vmem:[%s4180_s20 + $0x40] sm:$0xff] }
  0x25   : > { %v648_v1 = vld [vmem:[%s4168_s18 + $0xe0] sm:$0xff]  ;;  %v666_v2 = vld [vmem:[%s4160_s29 + $0x50] sm:$0xff]  ;;  %v649_v3 = vld [vmem:[%s4168_s18 + $0xe8] sm:$0xff] }
  0x26   : > { %3300 = vmatmul.mubr.msk.f32.gmra.mrb[8].mxu0 %vm887_vm0, %v629_v27  ;;  %v1481_v4 = vld [vmem:[%s4180_s20 + $0x48] sm:$0xff]  ;;  %v650_v5 = vld [vmem:[%s4168_s18 + $0xf0] sm:$0xff]  ;;  %v667_v6 = vld [vmem:[%s4160_s29 + $0x58] sm:$0xff] }
  0x27   : > { %1517 = vperm.xlu1 %3705, %v1474_v28   ;;  %3302 = vmatprep.mubr.msk.f32.mxu0 %vm887_vm0, %v630_v29  ;;  %v651_v7 = vld [vmem:[%s4168_s18 + $0xf8] sm:$0xff]  ;;  %v1219_v9 = vld [vmem:[%s4154_s24 + $0x50] sm:$0xff]  ;;  %v668_v11 = vld [vmem:[%s4160_s29 + $0x60] sm:$0xff]  ;;  %s4988_s18 = scalar_lea.vmem %s5099_s17, %s4148_s21 }
  0x28   : > { %711 = vperm.xlu0 %3704, %v660_v30   ;;  %v1220_v8 = vld [vmem:[%s4154_s24 + $0x58] sm:$0xff]  ;;  %v1482_v10 = vld [vmem:[%s4180_s20 + $0x50] sm:$0xff]  ;;  %v669_v13 = vld [vmem:[%s4160_s29 + $0x68] sm:$0xff] }
  0x29   : > { %v1483_v12 = vld [vmem:[%s4180_s20 + $0x58] sm:$0xff]  ;;  %v1222_v14 = vld [vmem:[%s4154_s24 + $0x68] sm:$0xff]  ;;  %v1221_v15 = vld [vmem:[%s4154_s24 + $0x60] sm:$0xff] }
  0x2a   : > { %3303 = vmatmul.mubr.msk.f32.gmra.mrb[10].mxu0 %vm887_vm0, %v631_v31  ;;  %v1806_v16 = vld [vmem:[%s5091_s9] sm:$0xff]  ;;  %v1807_v17 = vld [vmem:[%s5091_s9 + $0x8] sm:$0xff]  ;;  %v670_v20 = vld [vmem:[%s4160_s29 + $0x70] sm:$0xff] }
  0x2b   : > { %1522 = vperm.xlu1 %3705, %v1475_v32   ;;  %3305 = vmatprep.mubr.msk.f32.mxu0 %vm887_vm0, %v632_v33  ;;  %v3583_v18 = vpack.c.bf16 %v1807_v17, %v1806_v16  ;;  %v1484_v19 = vld [vmem:[%s4180_s20 + $0x60] sm:$0xff]  ;;  %v1808_v21 = vld [vmem:[%s5091_s9 + $0x10] sm:$0xff]  ;;  %v1809_v22 = vld [vmem:[%s5091_s9 + $0x18] sm:$0xff] }
  0x2c   : > { %716 = vperm.xlu0 %3704, %v661_v34   ;;  %v3587_v23 = vpack.c.bf16 %v1809_v22, %v1808_v21  ;;  %v1485_v24 = vld [vmem:[%s4180_s20 + $0x68] sm:$0xff]  ;;  %v671_v25 = vld [vmem:[%s4160_s29 + $0x78] sm:$0xff]  ;;  %v1810_v26 = vld [vmem:[%s5091_s9 + $0x20] sm:$0xff] }
  0x2d   : > { %3584 = vmatprep.subr.bf16.mxu1 %v3583_v18  ;;  %v1811_v27 = vld [vmem:[%s5091_s9 + $0x28] sm:$0xff]  ;;  %v1224_v29 = vld [vmem:[%s4154_s24 + $0x78] sm:$0xff]  ;;  %v1223_v30 = vld [vmem:[%s4154_s24 + $0x70] sm:$0xff] }
  0x2e   : > { %3306 = vmatmul.mubr.msk.f32.gmra.mrb[12].mxu0 %vm887_vm0, %v633_v35  ;;  %3586 = vmatpush3.bf16.msra.mxu1 %v3583_v18  ;;  %v3591_v28 = vpack.c.bf16 %v1811_v27, %v1810_v26  ;;  %v1812_v31 = vld [vmem:[%s5091_s9 + $0x30] sm:$0xff]  ;;  %v1813_v32 = vld [vmem:[%s5091_s9 + $0x38] sm:$0xff]  ;;  %v672_v35 = vld [vmem:[%s4160_s29 + $0x80] sm:$0xff] }
  0x2f   : > { %1269 = vperm.xlu1 %3705, %v1214_v36   ;;  %3308 = vmatprep.mubr.msk.f32.mxu0 %vm887_vm0, %v634_v37  ;;  %v3595_v33 = vpack.c.bf16 %v1813_v32, %v1812_v31  ;;  %v1486_v34 = vld [vmem:[%s4180_s20 + $0x70] sm:$0xff]  ;;  %v1814_v36 = vld [vmem:[%s5091_s9 + $0x40] sm:$0xff]  ;;  %v1815_v37 = vld [vmem:[%s5091_s9 + $0x48] sm:$0xff] }
  0x30   : > { %1264 = vperm.xlu0 %3704, %v1213_v38   ;;  %3588 = vmatprep.subr.bf16.mxu1 %v3587_v23  ;;  %v3599_v38 = vpack.c.bf16 %v1815_v37, %v1814_v36  ;;  %v1495_v16 = vld [vmem:[%s4180_s20 + $0xb8] sm:$0xff]  ;;  %v681_v17 = vld [vmem:[%s4160_s29 + $0xc8] sm:$0xff]  ;;  %v1233_v21 = vld [vmem:[%s4154_s24 + $0xc0] sm:$0xff] }
  0x31   : > { %v1236_v32 = vld [vmem:[%s4154_s24 + $0xd8] sm:$0xff]  ;;  %v1498_v36 = vld [vmem:[%s4180_s20 + $0xd0] sm:$0xff]  ;;  %v684_v37 = vld [vmem:[%s4160_s29 + $0xe0] sm:$0xff] }
  0x32   : > { %3309 = vmatmul.mubr.msk.f32.gmra.mrb[14].mxu0 %vm887_vm0, %v635_v39  ;;  %3590 = vmatpush3.bf16.msra.mxu1 %v3587_v23  ;;  %v1487_v39 = vld [vmem:[%s4180_s20 + $0x78] sm:$0xff] }
  0x33   : > { %1527 = vperm.xlu1 %3705, %v1476_v40   ;;  %3311 = vmatprep.mubr.msk.f32.mxu0 %vm887_vm0, %v636_v41  ;;  %v673_v40 = vld [vmem:[%s4160_s29 + $0x88] sm:$0xff]  ;;  %v1816_v41 = vld [vmem:[%s5091_s9 + $0x50] sm:$0xff] }
  0x34   : > { %721 = vperm.xlu0 %3704, %v662_v42   ;;  %3592 = vmatprep.subr.bf16.mxu1 %v3591_v28  ;;  %v1817_v42 = vld [vmem:[%s5091_s9 + $0x58] sm:$0xff] }
  0x36   : > { %3312 = vmatmul.mubr.msk.f32.gmra.mrb[16].mxu0 %vm887_vm0, %v637_v43  ;;  %3594 = vmatpush3.bf16.msra.mxu1 %v3591_v28  ;;  %v3603_v43 = vpack.c.bf16 %v1817_v42, %v1816_v41  ;;  %v1497_v28 = vld [vmem:[%s4180_s20 + $0xc8] sm:$0xff] }
  0x37   : > { %1532 = vperm.xlu1 %3705, %v1477_v44   ;;  %3314 = vmatprep.mubr.msk.f32.mxu0 %vm887_vm0, %v638_v45  ;;  %v1226_v44 = vld [vmem:[%s4154_s24 + $0x88] sm:$0xff]  ;;  %v1225_v45 = vld [vmem:[%s4154_s24 + $0x80] sm:$0xff] }
  0x38   : > { %726 = vperm.xlu0 %3704, %v663_v46   ;;  %3596 = vmatprep.subr.bf16.mxu1 %v3595_v33  ;;  %v1818_v46 = vld [vmem:[%s5091_s9 + $0x60] sm:$0xff]  ;;  %v685_v41 = vld [vmem:[%s4160_s29 + $0xe8] sm:$0xff] }
  0x3a   : > { %3315 = vmatmul.mubr.msk.f32.gmra.mrb[18].mxu0 %vm887_vm0, %v639_v47  ;;  %3598 = vmatpush3.bf16.msra.mxu1 %v3595_v33  ;;  %v1819_v47 = vld [vmem:[%s5091_s9 + $0x68] sm:$0xff]  ;;  %v1235_v33 = vld [vmem:[%s4154_s24 + $0xd0] sm:$0xff] }
  0x3b   : > { %1279 = vperm.xlu1 %3705, %v1216_v48   ;;  %3317 = vmatprep.mubr.msk.f32.mxu0 %vm887_vm0, %v640_v49  ;;  %v3607_v48 = vpack.c.bf16 %v1819_v47, %v1818_v46  ;;  %v1488_v49 = vld [vmem:[%s4180_s20 + $0x80] sm:$0xff] }
  0x3c   : > { %1274 = vperm.xlu0 %3704, %v1215_v50   ;;  %3600 = vmatprep.subr.bf16.mxu1 %v3599_v38  ;;  %v674_v50 = vld [vmem:[%s4160_s29 + $0x90] sm:$0xff] }
  0x3e   : > { %3318 = vmatmul.mubr.msk.f32.gmra.mrb[20].mxu0 %vm887_vm0, %v641_v51  ;;  %3602 = vmatpush3.bf16.msra.mxu1 %v3599_v38  ;;  %v1820_v51 = vld [vmem:[%s5091_s9 + $0x70] sm:$0xff] }
  0x3f   : > { %1537 = vperm.xlu1 %3705, %v1478_v52   ;;  %3320 = vmatprep.mubr.msk.f32.mxu0 %vm887_vm0, %v642_v53  ;;  %v1821_v52 = vld [vmem:[%s5091_s9 + $0x78] sm:$0xff] }
  0x40   : > { %731 = vperm.xlu0 %3704, %v664_v54   ;;  %3604 = vmatprep.subr.bf16.mxu1 %v3603_v43  ;;  %v3611_v53 = vpack.c.bf16 %v1821_v52, %v1820_v51  ;;  %v1489_v54 = vld [vmem:[%s4180_s20 + $0x88] sm:$0xff] }
  0x41   : > { %v1501_v52 = vld [vmem:[%s4180_s20 + $0xe8] sm:$0xff] }
  0x42   : > { %3321 = vmatmul.mubr.msk.f32.gmra.mrb[22].mxu0 %vm887_vm0, %v643_v55  ;;  %3606 = vmatpush3.bf16.msra.mxu1 %v3603_v43  ;;  %v675_v55 = vld [vmem:[%s4160_s29 + $0x98] sm:$0xff] }
  0x43   : > { %1542 = vperm.xlu1 %3705, %v1479_v56   ;;  %3323 = vmatprep.mubr.msk.f32.mxu0 %vm887_vm0, %v644_v57  ;;  %v1228_v56 = vld [vmem:[%s4154_s24 + $0x98] sm:$0xff]  ;;  %v1227_v57 = vld [vmem:[%s4154_s24 + $0x90] sm:$0xff] }
  0x44   : > { %736 = vperm.xlu0 %3704, %v665_v58   ;;  %3608 = vmatprep.subr.bf16.mxu1 %v3607_v48  ;;  %v1490_v58 = vld [vmem:[%s4180_s20 + $0x90] sm:$0xff] }
  0x46   : > { %3324 = vmatmul.mubr.msk.f32.gmra.mrb[24].mxu0 %vm887_vm0, %v645_v59  ;;  %3610 = vmatpush3.bf16.msra.mxu1 %v3607_v48  ;;  %v676_v59 = vld [vmem:[%s4160_s29 + $0xa0] sm:$0xff] }
  0x47   : > { %1289 = vperm.xlu1 %3705, %v1218_v60   ;;  %3326 = vmatprep.mubr.msk.f32.mxu0 %vm887_vm0, %v646_v61  ;;  %v1491_v60 = vld [vmem:[%s4180_s20 + $0x98] sm:$0xff]  ;;  %v677_v61 = vld [vmem:[%s4160_s29 + $0xa8] sm:$0xff]  ;;  %v1500_v48 = vld [vmem:[%s4180_s20 + $0xe0] sm:$0xff] }
  0x48   : > { %1284 = vperm.xlu0 %3704, %v1217_v62   ;;  %3612 = vmatprep.subr.bf16.mxu1 %v3611_v53  ;;  %v1230_v62 = vld [vmem:[%s4154_s24 + $0xa8] sm:$0xff] }
  0x4a   : > { %3327 = vmatmul.mubr.msk.f32.gmra.mrb[26].mxu0 %vm887_vm0, %v647_v63  ;;  %3614 = vmatpush3.bf16.msra.mxu1 %v3611_v53  ;;  %v1229_v63 = vld [vmem:[%s4154_s24 + $0xa0] sm:$0xff]  ;;  %v687_v53 = vld [vmem:[%s4160_s29 + $0xf8] sm:$0xff] }
  0x4b   : > { %1547 = vperm.xlu1 %3705, %v1480_v0   ;;  %3329 = vmatprep.mubr.msk.f32.mxu0 %vm887_vm0, %v648_v1  ;;  %v1492_v0 = vld [vmem:[%s4180_s20 + $0xa0] sm:$0xff]  ;;  %v678_v1 = vld [vmem:[%s4160_s29 + $0xb0] sm:$0xff] }
  0x4c   : > { %741 = vperm.xlu0 %3704, %v666_v2  }
  0x4e   : > { %3330 = vmatmul.mubr.msk.f32.gmra.mrb[28].mxu0 %vm887_vm0, %v649_v3 }
  0x4f   : > { %1552 = vperm.xlu1 %3705, %v1481_v4   ;;  %3332 = vmatprep.mubr.msk.f32.mxu0 %vm887_vm0, %v650_v5  ;;  %v1493_v4 = vld [vmem:[%s4180_s20 + $0xa8] sm:$0xff]  ;;  %v679_v5 = vld [vmem:[%s4160_s29 + $0xb8] sm:$0xff] }
  0x50   : > { %746 = vperm.xlu0 %3704, %v667_v6  }
  0x52   : > { %3333 = vmatmul.mubr.msk.f32.gmra.mrb[30].mxu0 %vm887_vm0, %v651_v7 }
  0x53   : > { %1299 = vperm.xlu1 %3705, %v1220_v8   ;;  %v1232_v8 = vld [vmem:[%s4154_s24 + $0xb8] sm:$0xff] }
  0x54   : > { %1294 = vperm.xlu0 %3704, %v1219_v9   ;;  %v1231_v9 = vld [vmem:[%s4154_s24 + $0xb0] sm:$0xff] }
  0x57   : > { %1557 = vperm.xlu1 %3705, %v1482_v10  }
  0x58   : > { %751 = vperm.xlu0 %3704, %v668_v11  }
  0x5b   : > { %1562 = vperm.xlu1 %3705, %v1483_v12   ;;  %v1494_v12 = vld [vmem:[%s4180_s20 + $0xb0] sm:$0xff] }
  0x5c   : > { %756 = vperm.xlu0 %3704, %v669_v13   ;;  %v680_v13 = vld [vmem:[%s4160_s29 + $0xc0] sm:$0xff] }
  0x5f   : > { %1309 = vperm.xlu1 %3705, %v1222_v14  }
  0x60   : > { %1304 = vperm.xlu0 %3704, %v1221_v15  }
  0x63   : > { %1567 = vperm.xlu1 %3705, %v1484_v19  }
  0x64   : > { %761 = vperm.xlu0 %3704, %v670_v20   ;;  %v1234_v20 = vld [vmem:[%s4154_s24 + $0xc8] sm:$0xff] }
  0x67   : > { %1572 = vperm.xlu1 %3705, %v1485_v24   ;;  %v1496_v24 = vld [vmem:[%s4180_s20 + $0xc0] sm:$0xff] }
  0x68   : > { %766 = vperm.xlu0 %3704, %v671_v25   ;;  %v682_v25 = vld [vmem:[%s4160_s29 + $0xd0] sm:$0xff] }
  0x6b   : > { %1319 = vperm.xlu1 %3705, %v1224_v29   ;;  %v683_v29 = vld [vmem:[%s4160_s29 + $0xd8] sm:$0xff] }
  0x6c   : > { %1314 = vperm.xlu0 %3704, %v1223_v30  }
  0x6f   : > { %1577 = vperm.xlu1 %3705, %v1486_v34  }
  0x70   : > { %771 = vperm.xlu0 %3704, %v672_v35  }
  0x73   : > { %1582 = vperm.xlu1 %3705, %v1487_v39  }
  0x74   : > { %776 = vperm.xlu0 %3704, %v673_v40   ;;  %v1499_v40 = vld [vmem:[%s4180_s20 + $0xd8] sm:$0xff] }
  0x77   : > { %1329 = vperm.xlu1 %3705, %v1226_v44   ;;  %v1238_v44 = vld [vmem:[%s4154_s24 + $0xe8] sm:$0xff] }
  0x78   : > { %1324 = vperm.xlu0 %3704, %v1225_v45   ;;  %v1237_v45 = vld [vmem:[%s4154_s24 + $0xe0] sm:$0xff] }
  0x7b   : > { %1587 = vperm.xlu1 %3705, %v1488_v49   ;;  %v686_v49 = vld [vmem:[%s4160_s29 + $0xf0] sm:$0xff] }
  0x7c   : > { %781 = vperm.xlu0 %3704, %v674_v50  }
  0x7f   : > { %1592 = vperm.xlu1 %3705, %v1489_v54  }
  0x80   : > { %786 = vperm.xlu0 %3704, %v675_v55  }
  0x83   : > { %1339 = vperm.xlu1 %3705, %v1228_v56   ;;  %v1240_v56 = vld [vmem:[%s4154_s24 + $0xf8] sm:$0xff] }
  0x84   : > { %1334 = vperm.xlu0 %3704, %v1227_v57   ;;  %v1239_v57 = vld [vmem:[%s4154_s24 + $0xf0] sm:$0xff] }
  0x87   : > { %1597 = vperm.xlu1 %3705, %v1490_v58  }
  0x88   : > { %791 = vperm.xlu0 %3704, %v676_v59  }
  0x8b   : > { %1602 = vperm.xlu1 %3705, %v1491_v60   ;;  %v1503_v60 = vld [vmem:[%s4180_s20 + $0xf8] sm:$0xff] }
  0x8c   : > { %796 = vperm.xlu0 %3704, %v677_v61   ;;  %v1502_v61 = vld [vmem:[%s4180_s20 + $0xf0] sm:$0xff] }
  0x8f   : > { %1349 = vperm.xlu1 %3705, %v1230_v62  }
  0x90   : > { %1344 = vperm.xlu0 %3704, %v1229_v63  }
  0x92   : > { %v4352_v2 = vpop.permute.xlu1 %1244 }
  0x93   : > { %v4354_v3 = vpop.permute.xlu0 %691  ;;  %1607 = vperm.xlu1 %3705, %v1492_v0  }
  0x94   : > { %801 = vperm.xlu0 %3704, %v678_v1  }
  0x96   : > { %v4358_v6 = vpop.permute.xlu1 %1249 }
  0x97   : > { %v4360_v7 = vpop.permute.xlu0 %696  ;;  %1612 = vperm.xlu1 %3705, %v1493_v4  }
  0x98   : > { %806 = vperm.xlu0 %3704, %v679_v5  }
  0x9a   : > { %v4364_v10 = vpop.permute.xlu1 %1507 }
  0x9b   : > { %v4366_v11 = vpop.permute.xlu0 %701  ;;  %1359 = vperm.xlu1 %3705, %v1232_v8  }
  0x9c   : > { %1354 = vperm.xlu0 %3704, %v1231_v9  }
  0x9e   : > { %v4370_v14 = vpop.permute.xlu1 %1512 }
  0x9f   : > { %v4372_v15 = vpop.permute.xlu0 %706  ;;  %1617 = vperm.xlu1 %3705, %v1494_v12  }
  0xa0   : > { %811 = vperm.xlu0 %3704, %v680_v13  }
  0xa2   : > { %v4376_v18 = vpop.permute.xlu1 %1259 }
  0xa3   : > { %v4378_v19 = vpop.permute.xlu0 %1254  ;;  %1622 = vperm.xlu1 %3705, %v1495_v16  }
  0xa4   : > { %816 = vperm.xlu0 %3704, %v681_v17   ;;  %v2086_v17 = vld [vmem:[%s5093_s11] sm:$0xff] }
  0xa6   : > { %v4382_v22 = vpop.permute.xlu1 %1517 }
  0xa7   : > { %v4384_v23 = vpop.permute.xlu0 %711  ;;  %1369 = vperm.xlu1 %3705, %v1234_v20   ;;  %v2087_v20 = vld [vmem:[%s5093_s11 + $0x8] sm:$0xff] }
  0xa8   : > { %1364 = vperm.xlu0 %3704, %v1233_v21   ;;  %v2088_v21 = vld [vmem:[%s5093_s11 + $0x10] sm:$0xff] }
  0xaa   : > { %v4388_v26 = vpop.permute.xlu1 %1522 }
  0xab   : > { %v4390_v27 = vpop.permute.xlu0 %716  ;;  %1627 = vperm.xlu1 %3705, %v1496_v24  }
  0xac   : > { %821 = vperm.xlu0 %3704, %v682_v25   ;;  %v3615_v25 = vpack.c.bf16 %v2087_v20, %v2086_v17 }
  0xae   : > { %v4394_v30 = vpop.permute.xlu1 %1269  ;;  %3616 = vmatprep.subr.bf16.mxu0 %v3615_v25 }
  0xaf   : > { %v4396_v31 = vpop.permute.xlu0 %1264  ;;  %1632 = vperm.xlu1 %3705, %v1497_v28   ;;  %v2089_v28 = vld [vmem:[%s5093_s11 + $0x18] sm:$0xff]  ;;  %3618 = vmatpush3.bf16.msra.mxu0 %v3615_v25 }
  0xb0   : > { %826 = vperm.xlu0 %3704, %v683_v29   ;;  %v3619_v29 = vpack.c.bf16 %v2089_v28, %v2088_v21 }
  0xb2   : > { %v4400_v34 = vpop.permute.xlu1 %1527  ;;  %3620 = vmatprep.subr.bf16.mxu0 %v3619_v29 }
  0xb3   : > { %v4402_v35 = vpop.permute.xlu0 %721  ;;  %1379 = vperm.xlu1 %3705, %v1236_v32   ;;  %v2090_v32 = vld [vmem:[%s5093_s11 + $0x20] sm:$0xff]  ;;  %3622 = vmatpush3.bf16.msra.mxu0 %v3619_v29 }
  0xb4   : > { %1374 = vperm.xlu0 %3704, %v1235_v33   ;;  %v2091_v33 = vld [vmem:[%s5093_s11 + $0x28] sm:$0xff] }
  0xb6   : > { %v4406_v38 = vpop.permute.xlu1 %1532 }
  0xb7   : > { %v4408_v39 = vpop.permute.xlu0 %726  ;;  %1637 = vperm.xlu1 %3705, %v1498_v36   ;;  %v4487_v36 = vld [vmem:[%s5087_s5] ss:$0 sm:$0xff] }
  0xb8   : > { %831 = vperm.xlu0 %3704, %v684_v37   ;;  %v858_v25 = vmul.f32 %v4487_v36, %v4372_v15  ;;  %v857_v29 = vmul.f32 %v4487_v36, %v4366_v11 }
  0xba   : > { %v4412_v42 = vpop.permute.xlu1 %1279 }
  0xbb   : > { %v4414_v43 = vpop.permute.xlu0 %1274  ;;  %1642 = vperm.xlu1 %3705, %v1499_v40  }
  0xbc   : > { %836 = vperm.xlu0 %3704, %v685_v41   ;;  %v3623_v41 = vpack.c.bf16 %v2091_v33, %v2090_v32 }
  0xbe   : > { %v4418_v46 = vpop.permute.xlu1 %1537  ;;  %3624 = vmatprep.subr.bf16.mxu0 %v3623_v41 }
  0xbf   : > { %v4420_v47 = vpop.permute.xlu0 %731  ;;  %1389 = vperm.xlu1 %3705, %v1238_v44   ;;  %v4496_v44 = vld [vmem:[%s5088_s6] ss:$0 sm:$0xff]  ;;  %3626 = vmatpush3.bf16.msra.mxu0 %v3623_v41 }
  0xc0   : > { %1384 = vperm.xlu0 %3704, %v1237_v45   ;;  %v856_v45 = vmul.f32 %v4487_v36, %v4360_v7  ;;  %v1408_v17 = vmul.f32 %v4496_v44, %v4352_v2  ;;  %v4532_v2 = vld [vmem:[%s5090_s8] ss:$0 sm:$0xff] }
  0xc2   : > { %v4424_v50 = vpop.permute.xlu1 %1542 }
  0xc3   : > { %v4426_v51 = vpop.permute.xlu0 %736  ;;  %1647 = vperm.xlu1 %3705, %v1500_v48   ;;  %v2092_v48 = vld [vmem:[%s5093_s11 + $0x30] sm:$0xff] }
  0xc4   : > { %841 = vperm.xlu0 %3704, %v686_v49   ;;  %v2093_v49 = vld [vmem:[%s5093_s11 + $0x38] sm:$0xff] }
  0xc5   : > { %v3627_v21 = vpack.c.bf16 %v2093_v49, %v2092_v48 }
  0xc6   : > { %v4430_v54 = vpop.permute.xlu1 %1289 }
  0xc7   : > { %v4432_v55 = vpop.permute.xlu0 %1284  ;;  %1652 = vperm.xlu1 %3705, %v1501_v52   ;;  %v855_v52 = vmul.f32 %v4487_v36, %v4354_v3  ;;  %3628 = vmatprep.subr.bf16.mxu0 %v3627_v21 }
  0xc8   : > { %846 = vperm.xlu0 %3704, %v687_v53   ;;  %3630 = vmatpush3.bf16.msra.mxu0 %v3627_v21  ;;  %v861_v21 = vmul.f32 %v4487_v36, %v4402_v35 }
  0xca   : > { %v4436_v58 = vpop.permute.xlu1 %1547 }
  0xcb   : > { %v4438_v59 = vpop.permute.xlu0 %741  ;;  %1399 = vperm.xlu1 %3705, %v1240_v56   ;;  %v1409_v56 = vmul.f32 %v4496_v44, %v4358_v6 }
  0xcc   : > { %1394 = vperm.xlu0 %3704, %v1239_v57   ;;  %v4513_v57 = vld [vmem:[%s5089_s7] ss:$0 sm:$0xff] }
  0xcd   : > { %v1672_v6 = vmul.f32 %v4513_v57, %v4370_v14  ;;  %v1671_v32 = vmul.f32 %v4513_v57, %v4364_v10  ;;  %v1411_v14 = vmul.f32 %v4496_v44, %v4376_v18  ;;  %v1410_v10 = vmul.f32 %v4496_v44, %v4378_v19 }
  0xce   : > { %v4442_v62 = vpop.permute.xlu1 %1552  ;;  %v860_v18 = vmul.f32 %v4487_v36, %v4390_v27  ;;  %v1673_v41 = vmul.f32 %v4513_v57, %v4382_v22  ;;  %v859_v19 = vmul.f32 %v4487_v36, %v4384_v23  ;;  %v1676_v22 = vmul.f32 %v4513_v57, %v4406_v38 }
  0xcf   : > { %v4444_v63 = vpop.permute.xlu0 %746  ;;  %1662 = vperm.xlu1 %3705, %v1503_v60  }
  0xd0   : > { %1657 = vperm.xlu0 %3704, %v1502_v61  }
  0xd2   : > { %v4446_v0 = vpop.permute.xlu1 %1299 }
  0xd3   : > { %v4448_v1 = vpop.permute.xlu0 %1294 }
  0xd6   : > { %v4450_v4 = vpop.permute.xlu1 %1557 }
  0xd7   : > { %v4452_v5 = vpop.permute.xlu0 %751 }
  0xda   : > { %v4454_v8 = vpop.permute.xlu1 %1562 }
  0xdb   : > { %v4456_v9 = vpop.permute.xlu0 %756 }
  0xde   : > { %v4458_v12 = vpop.permute.xlu1 %1309 }
  0xdf   : > { %v4460_v13 = vpop.permute.xlu0 %1304 }
  0xe2   : > { %v4462_v16 = vpop.permute.xlu1 %1567 }
  0xe3   : > { %v4473_v24 = vpop.permute.xlu0 %761 }
  0xe6   : > { %v4489_v37 = vpop.permute.xlu1 %1572 }
  0xe7   : > { %v4491_v40 = vpop.permute.xlu0 %766 }
  0xe9   : > { %v3289_v53 = vpop.f32.mrb[0].mxu0 }
  0xea   : > { %v1056_v7 = vadd.f32 %v3289_v53, %v856_v45  ;;  %v4515_v60 = vpop.permute.xlu1 %1319  ;;  %v1050_v61 = vpop.f32.mrb[1].mxu0 }
  0xeb   : > { %v4519_v20 = vpop.permute.xlu0 %1314  ;;  %v1051_v3 = vadd.f32 %v1050_v61, %v855_v52 }
  0xec   : > { %v1441_v28 = vadd.f32 %v1409_v56, %v1056_v7  ;;  %v1674_v7 = vmul.f32 %v4513_v57, %v4388_v26  ;;  %v1412_v26 = vmul.f32 %v4496_v44, %v4396_v31 }
  0xed   : > { %v1440_v33 = vadd.f32 %v1408_v17, %v1051_v3  ;;  %v3292_v45 = vpop.f32.mrb[2].mxu0 }
  0xee   : > { %v1704_v48 = vadd.f32 %v1672_v6, %v1441_v28  ;;  %v1066_v49 = vadd.f32 %v3292_v45, %v858_v25  ;;  %v4536_v15 = vpop.permute.xlu1 %1577  ;;  %v1060_v52 = vpop.f32.mrb[3].mxu0  ;;  %v1413_v28 = vmul.f32 %v4496_v44, %v4394_v30  ;;  %v862_v30 = vmul.f32 %v4487_v36, %v4408_v39 }
  0xef   : > { %v1703_v11 = vadd.f32 %v1671_v32, %v1440_v33  ;;  %v4540_v53 = vpop.permute.xlu0 %771  ;;  %v1061_v56 = vadd.f32 %v1060_v52, %v857_v29  ;;  %v1414_v39 = vmul.f32 %v4496_v44, %v4414_v43 }
  0xf0   : > { %v1743_v61 = vadd.f32 %v4532_v2, %v1704_v48  ;;  %v1443_v17 = vadd.f32 %v1411_v14, %v1066_v49  ;;  %v1675_v49 = vmul.f32 %v4513_v57, %v4400_v34  ;;  %v1678_v34 = vmul.f32 %v4513_v57, %v4424_v50 }
  0xf1   : > { %v1442_v3 = vadd.f32 %v1410_v10, %v1061_v56  ;;  %v3295_v6 = vpop.f32.mrb[4].mxu0  ;;  %v1742_v25 = vadd.f32 %v4532_v2, %v1703_v11  ;;  %v1415_v11 = vmul.f32 %v4496_v44, %v4412_v42 }
  0xf2   : > { %v1706_v27 = vadd.f32 %v1674_v7, %v1443_v17  ;;  %v1076_v32 = vadd.f32 %v3295_v6, %v860_v18  ;;  %v4556_v29 = vpop.permute.xlu1 %1582  ;;  %v1070_v33 = vpop.f32.mrb[5].mxu0  ;;  %v863_v6 = vmul.f32 %v4487_v36, %v4420_v47 }
  0xf3   : > { %v1705_v23 = vadd.f32 %v1673_v41, %v1442_v3  ;;  %v4560_v45 = vpop.permute.xlu0 %776  ;;  %v1071_v14 = vadd.f32 %v1070_v33, %v859_v19  ;;  %3706 = vtanh.f32 %v1742_v25  ;;  %v864_v19 = vmul.f32 %v4487_v36, %v4426_v51 }
  0xf4   : > { %3708 = vtanh.f32 %v1743_v61  ;;  %v1745_v31 = vadd.f32 %v4532_v2, %v1706_v27  ;;  %v1445_v48 = vadd.f32 %v1413_v28, %v1076_v32  ;;  %v1677_v3 = vmul.f32 %v4513_v57, %v4418_v46 }
  0xf5   : > { %v1744_v38 = vadd.f32 %v4532_v2, %v1705_v23  ;;  %v1444_v52 = vadd.f32 %v1412_v26, %v1071_v14  ;;  %v3298_v10 = vpop.f32.mrb[6].mxu0  ;;  %v1417_v26 = vmul.f32 %v4496_v44, %v4430_v54  ;;  %v1416_v51 = vmul.f32 %v4496_v44, %v4432_v55 }
  0xf6   : > { %v1708_v56 = vadd.f32 %v1676_v22, %v1445_v48  ;;  %v1086_v7 = vadd.f32 %v3298_v10, %v862_v30  ;;  %v4574_v18 = vpop.permute.xlu1 %1329  ;;  %v1080_v61 = vpop.f32.mrb[7].mxu0  ;;  %v1680_v46 = vmul.f32 %v4513_v57, %v4442_v62  ;;  %v866_v30 = vmul.f32 %v4487_v36, %v4444_v63 }
  0xf7   : > { %3710 = vtanh.f32 %v1744_v38  ;;  %v1707_v35 = vadd.f32 %v1675_v49, %v1444_v52  ;;  %v4578_v17 = vpop.permute.xlu0 %1324  ;;  %v1081_v41 = vadd.f32 %v1080_v61, %v861_v21  ;;  %v1679_v48 = vmul.f32 %v4513_v57, %v4436_v58 }
  0xf8   : > { %3712 = vtanh.f32 %v1745_v31  ;;  %v1747_v42 = vadd.f32 %v4532_v2, %v1708_v56  ;;  %v1447_v43 = vadd.f32 %v1415_v11, %v1086_v7  ;;  %v865_v49 = vmul.f32 %v4487_v36, %v4438_v59 }
  0xf9   : > { %v1746_v50 = vadd.f32 %v4532_v2, %v1707_v35  ;;  %v1446_v25 = vadd.f32 %v1414_v39, %v1081_v41  ;;  %v3301_v28 = vpop.f32.mrb[8].mxu0  ;;  %v1419_v10 = vmul.f32 %v4496_v44, %v4446_v0  ;;  %v1418_v63 = vmul.f32 %v4496_v44, %v4448_v1 }
  0xfa   : > { %v1710_v27 = vadd.f32 %v1678_v34, %v1447_v43  ;;  %v1096_v32 = vadd.f32 %v3301_v28, %v864_v19  ;;  %v4592_v33 = vpop.permute.xlu1 %1587  ;;  %v1090_v22 = vpop.f32.mrb[9].mxu0  ;;  %v1682_v58 = vmul.f32 %v4513_v57, %v4454_v8  ;;  %v868_v0 = vmul.f32 %v4487_v36, %v4456_v9 }
  0xfb   : > { %3714 = vtanh.f32 %v1746_v50  ;;  %v1709_v47 = vadd.f32 %v1677_v3, %v1446_v25  ;;  %v4596_v23 = vpop.permute.xlu0 %781  ;;  %v1091_v14 = vadd.f32 %v1090_v22, %v863_v6  ;;  %v1681_v19 = vmul.f32 %v4513_v57, %v4450_v4 }
  0xfc   : > { %3716 = vtanh.f32 %v1747_v42  ;;  %v1749_v54 = vadd.f32 %v4532_v2, %v1710_v27  ;;  %v1449_v55 = vadd.f32 %v1417_v26, %v1096_v32  ;;  %v867_v8 = vmul.f32 %v4487_v36, %v4452_v5 }
  0xfd   : > { %v3707_v31 = vpop.eup %3706  ;;  %v1748_v62 = vadd.f32 %v4532_v2, %v1709_v47  ;;  %v1448_v21 = vadd.f32 %v1416_v51, %v1091_v14  ;;  %v3304_v38 = vpop.f32.mrb[10].mxu0  ;;  %v1421_v50 = vmul.f32 %v4496_v44, %v4458_v12  ;;  %v1420_v9 = vmul.f32 %v4496_v44, %v4460_v13 }
  0xfe   : > { %v3709_v52 = vpop.eup %3708  ;;  %v1712_v11 = vadd.f32 %v1680_v46, %v1449_v55  ;;  %v1106_v39 = vadd.f32 %v3304_v38, %v866_v30  ;;  %v4610_v56 = vpop.permute.xlu1 %1592  ;;  %3367 = vmatprep.mubr.f32.mxu1 %v3707_v31  ;;  %v1684_v4 = vmul.f32 %v4513_v57, %v4489_v37  ;;  %v870_v12 = vmul.f32 %v4487_v36, %v4491_v40 }
  0xff   : > { %v1100_v7 = vpop.f32.mrb[11].mxu0  ;;  %3718 = vtanh.f32 %v1748_v62  ;;  %v1711_v59 = vadd.f32 %v1679_v48, %v1448_v21  ;;  %v4614_v61 = vpop.permute.xlu0 %786  ;;  %3368 = vmatmul.mubr.f32.vlgmr.msra.gmra.mrb[0].mxu1 %v3709_v52  ;;  %v1683_v47 = vmul.f32 %v4513_v57, %v4462_v16  ;;  %v869_v37 = vmul.f32 %v4487_v36, %v4473_v24 }
 0x100   : > { %v1101_v34 = vadd.f32 %v1100_v7, %v865_v49  ;;  %3720 = vtanh.f32 %v1749_v54  ;;  %v1751_v1 = vadd.f32 %v4532_v2, %v1712_v11  ;;  %v1451_v35 = vadd.f32 %v1419_v10, %v1106_v39 }
 0x101   : > { %v3711_v41 = vpop.eup %3710  ;;  %v1750_v42 = vadd.f32 %v4532_v2, %v1711_v59  ;;  %v3307_v3 = vpop.f32.mrb[12].mxu0  ;;  %v1423_v31 = vmul.f32 %v4496_v44, %v4515_v60  ;;  %v1422_v40 = vmul.f32 %v4496_v44, %v4519_v20  ;;  %v1686_v16 = vmul.f32 %v4513_v57, %v4556_v29 }
 0x102   : > { %v1450_v43 = vadd.f32 %v1418_v63, %v1101_v34  ;;  %v3713_v6 = vpop.eup %3712  ;;  %v1714_v25 = vadd.f32 %v1682_v58, %v1451_v35  ;;  %v1116_v28 = vadd.f32 %v3307_v3, %v868_v0  ;;  %v4628_v26 = vpop.permute.xlu1 %1339  ;;  %3370 = vmatprep.mubr.f32.mxu1 %v3711_v41  ;;  %v872_v10 = vmul.f32 %v4487_v36, %v4560_v45 }
 0x103   : > { %v1110_v51 = vpop.f32.mrb[13].mxu0  ;;  %3722 = vtanh.f32 %v1750_v42  ;;  %v4632_v27 = vpop.permute.xlu0 %1334  ;;  %3371 = vmatmul.mubr.f32.gmra.mrb[2].mxu1 %v3713_v6  ;;  %v1685_v11 = vmul.f32 %v4513_v57, %v4536_v15  ;;  %v871_v39 = vmul.f32 %v4487_v36, %v4540_v53  ;;  %v1425_v34 = vmul.f32 %v4496_v44, %v4574_v18 }
 0x104   : > { %v1713_v5 = vadd.f32 %v1681_v19, %v1450_v43  ;;  %v1111_v32 = vadd.f32 %v1110_v51, %v867_v8  ;;  %3724 = vtanh.f32 %v1751_v1  ;;  %v1753_v13 = vadd.f32 %v4532_v2, %v1714_v25 }
 0x105   : > { %v1453_v22 = vadd.f32 %v1421_v50, %v1116_v28  ;;  %v3715_v46 = vpop.eup %3714  ;;  %v3310_v54 = vpop.f32.mrb[14].mxu0  ;;  %v1424_v45 = vmul.f32 %v4496_v44, %v4578_v17  ;;  %v1688_v15 = vmul.f32 %v4513_v57, %v4610_v56  ;;  %v874_v42 = vmul.f32 %v4487_v36, %v4614_v61 }
 0x106   : > { %v1752_v14 = vadd.f32 %v4532_v2, %v1713_v5  ;;  %v1452_v30 = vadd.f32 %v1420_v9, %v1111_v32  ;;  %v3717_v55 = vpop.eup %3716  ;;  %v1126_v49 = vadd.f32 %v3310_v54, %v870_v12  ;;  %v1598_v62 = vpop.permute.xlu1 %1597  ;;  %3373 = vmatprep.mubr.f32.mxu1 %v3715_v46  ;;  %v1687_v3 = vmul.f32 %v4513_v57, %v4592_v33 }
 0x107   : > { %v1716_v48 = vadd.f32 %v1684_v4, %v1453_v22  ;;  %v1120_v21 = vpop.f32.mrb[15].mxu0  ;;  %v792_v38 = vpop.permute.xlu0 %791  ;;  %3374 = vmatmul.mubr.f32.gmra.mrb[4].mxu1 %v3717_v55  ;;  %v873_v6 = vmul.f32 %v4487_v36, %v4596_v23  ;;  %v1427_v28 = vmul.f32 %v4496_v44, %v4628_v26  ;;  %v1426_v61 = vmul.f32 %v4496_v44, %v4632_v27 }
 0x108   : > { %3726 = vtanh.f32 %v1752_v14  ;;  %v1715_v24 = vadd.f32 %v1683_v47, %v1452_v30  ;;  %v1121_v52 = vadd.f32 %v1120_v21, %v869_v37  ;;  %v1455_v20 = vadd.f32 %v1423_v31, %v1126_v49 }
 0x109   : > { %3728 = vtanh.f32 %v1753_v13  ;;  %v1755_v60 = vadd.f32 %v4532_v2, %v1716_v48  ;;  %v3719_v63 = vpop.eup %3718  ;;  %v3313_v58 = vpop.f32.mrb[16].mxu0  ;;  %v1689_v33 = vmul.f32 %v4513_v57, %v1598_v62  ;;  %v875_v27 = vmul.f32 %v4487_v36, %v792_v38 }
 0x10a   : > { %v1754_v29 = vadd.f32 %v4532_v2, %v1715_v24  ;;  %v1454_v7 = vadd.f32 %v1422_v40, %v1121_v52  ;;  %v3721_v59 = vpop.eup %3720  ;;  %v1718_v0 = vadd.f32 %v1686_v16, %v1455_v20  ;;  %v1136_v1 = vadd.f32 %v3313_v58, %v872_v10  ;;  %v1603_v35 = vpop.permute.xlu1 %1602  ;;  %3376 = vmatprep.mubr.f32.mxu1 %v3719_v63 }
 0x10b   : > { %v1130_v41 = vpop.f32.mrb[17].mxu0  ;;  %v797_v19 = vpop.permute.xlu0 %796  ;;  %3377 = vmatmul.mubr.f32.gmra.mrb[6].mxu1 %v3721_v59  ;;  %v1690_v26 = vmul.f32 %v4513_v57, %v1603_v35 }
 0x10c   : > { %3730 = vtanh.f32 %v1754_v29  ;;  %v1717_v53 = vadd.f32 %v1685_v11, %v1454_v7  ;;  %v1131_v8 = vadd.f32 %v1130_v41, %v871_v39  ;;  %v1757_v18 = vadd.f32 %v4532_v2, %v1718_v0 }
 0x10d   : > { %3732 = vtanh.f32 %v1755_v60  ;;  %v1457_v17 = vadd.f32 %v1425_v34, %v1136_v1  ;;  %v3723_v43 = vpop.eup %3722  ;;  %v3316_v9 = vpop.f32.mrb[18].mxu0  ;;  %v876_v37 = vmul.f32 %v4487_v36, %v797_v19 }
 0x10e   : > { %v1756_v56 = vadd.f32 %v4532_v2, %v1717_v53  ;;  %v1456_v50 = vadd.f32 %v1424_v45, %v1131_v8  ;;  %v3725_v25 = vpop.eup %3724  ;;  %v1146_v4 = vadd.f32 %v3316_v9, %v874_v42  ;;  %v1350_v5 = vpop.permute.xlu1 %1349  ;;  %3379 = vmatprep.mubr.f32.mxu1 %v3723_v43 }
 0x10f   : > { %v1720_v51 = vadd.f32 %v1688_v15, %v1457_v17  ;;  %v1140_v32 = vpop.f32.mrb[19].mxu0  ;;  %v1345_v12 = vpop.permute.xlu0 %1344  ;;  %3380 = vmatmul.mubr.f32.gmra.mrb[8].mxu1 %v3725_v25  ;;  %v1429_v10 = vmul.f32 %v4496_v44, %v1350_v5 }
 0x110   : > { %3734 = vtanh.f32 %v1756_v56  ;;  %v1719_v23 = vadd.f32 %v1687_v3, %v1456_v50  ;;  %v1141_v13 = vadd.f32 %v1140_v32, %v873_v6  ;;  %v1459_v46 = vadd.f32 %v1427_v28, %v1146_v4 }
 0x111   : > { %3736 = vtanh.f32 %v1757_v18  ;;  %v1759_v22 = vadd.f32 %v4532_v2, %v1720_v51  ;;  %v3319_v54 = vpop.f32.mrb[20].mxu0  ;;  %v1428_v40 = vmul.f32 %v4496_v44, %v1345_v12 }
 0x112   : > { %v3727_v47 = vpop.eup %3726  ;;  %v1758_v14 = vadd.f32 %v4532_v2, %v1719_v23  ;;  %v1458_v30 = vadd.f32 %v1426_v61, %v1141_v13  ;;  %v1722_v31 = vadd.f32 %v1690_v26, %v1459_v46  ;;  %v1608_v48 = vpop.permute.xlu1 %1607  ;;  %v1156_v21 = vadd.f32 %v3319_v54, %v876_v37 }
 0x113   : > { %v3729_v55 = vpop.eup %3728  ;;  %v1150_v49 = vpop.f32.mrb[21].mxu0  ;;  %3382 = vmatprep.mubr.f32.mxu1 %v3727_v47  ;;  %v1691_v20 = vmul.f32 %v4513_v57, %v1608_v48 }
 0x114   : > { %3738 = vtanh.f32 %v1758_v14  ;;  %v1721_v62 = vadd.f32 %v1689_v33, %v1458_v30  ;;  %v802_v16 = vpop.permute.xlu0 %801  ;;  %v1151_v24 = vadd.f32 %v1150_v49, %v875_v27  ;;  %3383 = vmatmul.mubr.f32.gmra.mrb[10].mxu1 %v3729_v55  ;;  %v1761_v38 = vadd.f32 %v4532_v2, %v1722_v31 }
 0x115   : > { %3740 = vtanh.f32 %v1759_v22  ;;  %v3322_v11 = vpop.f32.mrb[22].mxu0  ;;  %v1461_v58 = vadd.f32 %v1429_v10, %v1156_v21  ;;  %v877_v8 = vmul.f32 %v4487_v36, %v802_v16 }
 0x116   : > { %v3731_v52 = vpop.eup %3730  ;;  %v1760_v60 = vadd.f32 %v4532_v2, %v1721_v62  ;;  %v1460_v63 = vadd.f32 %v1428_v40, %v1151_v24  ;;  %v1613_v29 = vpop.permute.xlu1 %1612 }
 0x117   : > { %v3733_v39 = vpop.eup %3732  ;;  %v1160_v7 = vpop.f32.mrb[23].mxu0  ;;  %3385 = vmatprep.mubr.f32.mxu1 %v3731_v52  ;;  %v1692_v34 = vmul.f32 %v4513_v57, %v1613_v29 }
 0x118   : > { %3742 = vtanh.f32 %v1760_v60  ;;  %v1723_v59 = vadd.f32 %v1691_v20, %v1460_v63  ;;  %v807_v45 = vpop.permute.xlu0 %806  ;;  %3386 = vmatmul.mubr.f32.gmra.mrb[12].mxu1 %v3733_v39  ;;  %v1161_v6 = vadd.f32 %v1160_v7, %v877_v8 }
 0x119   : > { %3744 = vtanh.f32 %v1761_v38  ;;  %v1724_v35 = vadd.f32 %v1692_v34, %v1461_v58  ;;  %v3325_v41 = vpop.f32.mrb[24].mxu0  ;;  %v878_v3 = vmul.f32 %v4487_v36, %v807_v45 }
 0x11a   : > { %v3735_v0 = vpop.eup %3734  ;;  %v1762_v1 = vadd.f32 %v4532_v2, %v1723_v59  ;;  %v1360_v53 = vpop.permute.xlu1 %1359 }
 0x11b   : > { %v3737_v15 = vpop.eup %3736  ;;  %3388 = vmatprep.mubr.f32.mxu1 %v3735_v0  ;;  %v1170_v19 = vpop.f32.mrb[25].mxu0  ;;  %v1763_v42 = vadd.f32 %v4532_v2, %v1724_v35  ;;  %v1431_v28 = vmul.f32 %v4496_v44, %v1360_v53  ;;  %v1166_v32 = vadd.f32 %v3322_v11, %v878_v3 }
 0x11c   : > { %3746 = vtanh.f32 %v1762_v1  ;;  %v1355_v18 = vpop.permute.xlu0 %1354  ;;  %3389 = vmatmul.mubr.f32.gmra.mrb[14].mxu1 %v3737_v15 }
 0x11d   : > { %v1430_v17 = vmul.f32 %v4496_v44, %v1355_v18  ;;  %3748 = vtanh.f32 %v1763_v42  ;;  %v4691_v56 = vpop.f32.mrb[26].mxu0  ;;  %v1463_v26 = vadd.f32 %v1431_v28, %v1166_v32 }
 0x11e   : > { %v3739_v43 = vpop.eup %3738  ;;  %v1618_v9 = vpop.permute.xlu1 %1617 }
 0x11f   : > { %v3741_v50 = vpop.eup %3740  ;;  %3391 = vmatprep.mubr.f32.mxu1 %v3739_v43  ;;  %v1180_v25 = vpop.f32.mrb[27].mxu0  ;;  %v1462_v61 = vadd.f32 %v1430_v17, %v1161_v6  ;;  %v1693_v51 = vmul.f32 %v4513_v57, %v1618_v9 }
 0x120   : > { %v812_v4 = vpop.permute.xlu0 %811  ;;  %3392 = vmatmul.mubr.f32.gmra.mrb[16].mxu1 %v3741_v50 }
 0x121   : > { %v1725_v33 = vadd.f32 %v1693_v51, %v1462_v61  ;;  %v4695_v23 = vpop.f32.mrb[28].mxu0  ;;  %v879_v14 = vmul.f32 %v4487_v36, %v812_v4 }
 0x122   : > { %v3743_v5 = vpop.eup %3742  ;;  %v1623_v13 = vpop.permute.xlu1 %1622 }
 0x123   : > { %v3745_v12 = vpop.eup %3744  ;;  %3394 = vmatprep.mubr.f32.mxu1 %v3743_v5  ;;  %v4697_v22 = vpop.f32.mrb[29].mxu0  ;;  %v1764_v46 = vadd.f32 %v4532_v2, %v1725_v33  ;;  %v1694_v47 = vmul.f32 %v4513_v57, %v1623_v13  ;;  %v1171_v21 = vadd.f32 %v1170_v19, %v879_v14 }
 0x124   : > { %v817_v27 = vpop.permute.xlu0 %816  ;;  %3395 = vmatmul.mubr.f32.gmra.mrb[18].mxu1 %v3745_v12 }
 0x125   : > { %3750 = vtanh.f32 %v1764_v46  ;;  %v1726_v30 = vadd.f32 %v1694_v47, %v1463_v26  ;;  %v4702_v54 = vpop.f32.mrb[30].mxu0  ;;  %v880_v16 = vmul.f32 %v4487_v36, %v817_v27 }
 0x126   : > { %v3747_v37 = vpop.eup %3746  ;;  %v1370_v55 = vpop.permute.xlu1 %1369 }
 0x127   : > { %3397 = vmatprep.mubr.f32.mxu1 %v3747_v37  ;;  %v4704_v31 = vpop.f32.mrb[31].mxu0  ;;  %v3749_v40 = vpop.eup %3748  ;;  %v1765_v48 = vadd.f32 %v4532_v2, %v1726_v30  ;;  %v1433_v38 = vmul.f32 %v4496_v44, %v1370_v55  ;;  %v1176_v20 = vadd.f32 %v3325_v41, %v880_v16 }
 0x128   : > { %v1365_v49 = vpop.permute.xlu0 %1364  ;;  %3398 = vmatmul.mubr.f32.gmra.mrb[20].mxu1 %v3749_v40 }
 0x129   : > { %v1432_v62 = vmul.f32 %v4496_v44, %v1365_v49  ;;  %3752 = vtanh.f32 %v1765_v48  ;;  %v1465_v29 = vadd.f32 %v1433_v38, %v1176_v20 }
 0x12a   : > { %v1628_v24 = vpop.permute.xlu1 %1627 }
 0x12b   : > { %v1464_v52 = vadd.f32 %v1432_v62, %v1171_v21  ;;  %v1695_v10 = vmul.f32 %v4513_v57, %v1628_v24 }
 0x12c   : > { %v822_v60 = vpop.permute.xlu0 %821 }
 0x12d   : > { %v1727_v63 = vadd.f32 %v1695_v10, %v1464_v52  ;;  %v881_v34 = vmul.f32 %v4487_v36, %v822_v60 }
 0x12e   : > { %v1633_v11 = vpop.permute.xlu1 %1632 }
 0x12f   : > { %v3751_v39 = vpop.eup %3750  ;;  %v1766_v7 = vadd.f32 %v4532_v2, %v1727_v63  ;;  %v1696_v58 = vmul.f32 %v4513_v57, %v1633_v11  ;;  %v1181_v53 = vadd.f32 %v1180_v25, %v881_v34 }
 0x130   : > { %v827_v59 = vpop.permute.xlu0 %826  ;;  %3400 = vmatprep.mubr.f32.mxu1 %v3751_v39 }
 0x131   : > { %3754 = vtanh.f32 %v1766_v7  ;;  %v1728_v45 = vadd.f32 %v1696_v58, %v1465_v29  ;;  %v882_v19 = vmul.f32 %v4487_v36, %v827_v59 }
 0x132   : > { %v1380_v0 = vpop.permute.xlu1 %1379 }
 0x133   : > { %v3753_v1 = vpop.eup %3752  ;;  %v1767_v35 = vadd.f32 %v4532_v2, %v1728_v45  ;;  %v1435_v42 = vmul.f32 %v4496_v44, %v1380_v0  ;;  %v1186_v3 = vadd.f32 %v4691_v56, %v882_v19  ;;  %v2094_v0 = vld [vmem:[%s5093_s11 + $0x40] sm:$0xff] }
 0x134   : > { %v1375_v15 = vpop.permute.xlu0 %1374  ;;  %3401 = vmatmul.mubr.f32.gmra.mrb[22].mxu1 %v3753_v1 }
 0x135   : > { %v1434_v41 = vmul.f32 %v4496_v44, %v1375_v15  ;;  %3756 = vtanh.f32 %v1767_v35  ;;  %v1467_v28 = vadd.f32 %v1435_v42, %v1186_v3  ;;  %v2099_v42 = vld [vmem:[%s5093_s11 + $0x68] sm:$0xff] }
 0x136   : > { %v1638_v8 = vpop.permute.xlu1 %1637 }
 0x137   : > { %v1466_v18 = vadd.f32 %v1434_v41, %v1181_v53  ;;  %v1697_v17 = vmul.f32 %v4513_v57, %v1638_v8  ;;  %v2097_v53 = vld [vmem:[%s5093_s11 + $0x58] sm:$0xff] }
 0x138   : > { %v832_v43 = vpop.permute.xlu0 %831 }
 0x139   : > { %v1729_v6 = vadd.f32 %v1697_v17, %v1466_v18  ;;  %v883_v4 = vmul.f32 %v4487_v36, %v832_v43  ;;  %v2100_v17 = vld [vmem:[%s5093_s11 + $0x70] sm:$0xff]  ;;  %v2101_v43 = vld [vmem:[%s5093_s11 + $0x78] sm:$0xff] }
 0x13a   : > { %v1643_v50 = vpop.permute.xlu1 %1642  ;;  %v3643_v3 = vpack.c.bf16 %v2101_v43, %v2100_v17 }
 0x13b   : > { %v3755_v9 = vpop.eup %3754  ;;  %v1768_v61 = vadd.f32 %v4532_v2, %v1729_v6  ;;  %v1698_v25 = vmul.f32 %v4513_v57, %v1643_v50  ;;  %v1191_v26 = vadd.f32 %v4697_v22, %v883_v4 }
 0x13c   : > { %v837_v51 = vpop.permute.xlu0 %836  ;;  %3403 = vmatprep.mubr.f32.mxu1 %v3755_v9  ;;  %v2366_v9 = vld [vmem:[%s5095_s13] sm:$0xff] }
 0x13d   : > { %3758 = vtanh.f32 %v1768_v61  ;;  %v1730_v5 = vadd.f32 %v1698_v25, %v1467_v28  ;;  %v884_v46 = vmul.f32 %v4487_v36, %v837_v51  ;;  %v2367_v28 = vld [vmem:[%s5095_s13 + $0x8] sm:$0xff]  ;;  %v2368_v61 = vld [vmem:[%s5095_s13 + $0x10] sm:$0xff]  ;;  %v2369_v51 = vld [vmem:[%s5095_s13 + $0x18] sm:$0xff] }
 0x13e   : > { %v1390_v32 = vpop.permute.xlu1 %1389  ;;  %v3647_v25 = vpack.c.bf16 %v2367_v28, %v2366_v9  ;;  %v3651_v4 = vpack.c.bf16 %v2369_v51, %v2368_v61 }
 0x13f   : > { %v3757_v33 = vpop.eup %3756  ;;  %v1769_v12 = vadd.f32 %v4532_v2, %v1730_v5  ;;  %v1437_v27 = vmul.f32 %v4496_v44, %v1390_v32  ;;  %v1196_v55 = vadd.f32 %v4695_v23, %v884_v46  ;;  %v2370_v5 = vld [vmem:[%s5095_s13 + $0x20] sm:$0xff]  ;;  %v2371_v32 = vld [vmem:[%s5095_s13 + $0x28] sm:$0xff] }
 0x140   : > { %v1385_v13 = vpop.permute.xlu0 %1384  ;;  %3404 = vmatmul.mubr.f32.gmra.mrb[24].mxu1 %v3757_v33  ;;  %3679 = vmatprep.subr.bf16.mxu1 %v3647_v25  ;;  %v4785_v33 = vpack.c.bf16 %v2371_v32, %v2370_v5 }
 0x141   : > { %v1436_v56 = vmul.f32 %v4496_v44, %v1385_v13  ;;  %3760 = vtanh.f32 %v1769_v12  ;;  %v1469_v62 = vadd.f32 %v1437_v27, %v1196_v55  ;;  %3687 = vmatpush3.bf16.msra.mxu1 %v3647_v25  ;;  %v2372_v12 = vld [vmem:[%s5095_s13 + $0x30] sm:$0xff]  ;;  %v2373_v13 = vld [vmem:[%s5095_s13 + $0x38] sm:$0xff] }
 0x142   : > { %v1648_v47 = vpop.permute.xlu1 %1647  ;;  %3680 = vmatprep.subr.bf16.mxu1 %v3651_v4 }
 0x143   : > { %v1468_v37 = vadd.f32 %v1436_v56, %v1191_v26  ;;  %v1699_v14 = vmul.f32 %v4513_v57, %v1648_v47  ;;  %v4797_v56 = vld [vmem:[%s5092_s10] ss:$0 sm:$0xff]  ;;  %v4799_v26 = vpack.c.bf16 %v2373_v13, %v2372_v12 }
 0x144   : > { %v842_v30 = vpop.permute.xlu0 %841 }
 0x145   : > { %v1731_v40 = vadd.f32 %v1699_v14, %v1468_v37  ;;  %v885_v52 = vmul.f32 %v4487_v36, %v842_v30  ;;  %3688 = vmatpush3.bf16.msra.mxu1 %v3651_v4 }
 0x146   : > { %v1653_v48 = vpop.permute.xlu1 %1652  ;;  %3681 = vmatprep.subr.bf16.mxu1 %v4785_v33 }
 0x147   : > { %v3759_v49 = vpop.eup %3758  ;;  %v1770_v21 = vadd.f32 %v4532_v2, %v1731_v40  ;;  %v1700_v22 = vmul.f32 %v4513_v57, %v1653_v48  ;;  %v1201_v29 = vadd.f32 %v4704_v31, %v885_v52 }
 0x148   : > { %v847_v16 = vpop.permute.xlu0 %846  ;;  %3406 = vmatprep.mubr.f32.mxu1 %v3759_v49 }
 0x149   : > { %3762 = vtanh.f32 %v1770_v21  ;;  %v1732_v24 = vadd.f32 %v1700_v22, %v1469_v62  ;;  %v886_v38 = vmul.f32 %v4487_v36, %v847_v16  ;;  %3689 = vmatpush3.bf16.msra.mxu1 %v4785_v33 }
 0x14a   : > { %v1400_v10 = vpop.permute.xlu1 %1399  ;;  %3682 = vmatprep.subr.bf16.mxu1 %v4799_v26 }
 0x14b   : > { %v3761_v60 = vpop.eup %3760  ;;  %v1771_v23 = vadd.f32 %v4532_v2, %v1732_v24  ;;  %v1439_v20 = vmul.f32 %v4496_v44, %v1400_v10  ;;  %v1206_v39 = vadd.f32 %v4702_v54, %v886_v38 }
 0x14c   : > { %v1395_v63 = vpop.permute.xlu0 %1394  ;;  %3407 = vmatmul.mubr.f32.gmra.mrb[26].mxu1 %v3761_v60 }
 0x14d   : > { %v1438_v11 = vmul.f32 %v4496_v44, %v1395_v63  ;;  %3764 = vtanh.f32 %v1771_v23  ;;  %v1471_v58 = vadd.f32 %v1439_v20, %v1206_v39  ;;  %v2095_v44 = vld [vmem:[%s5093_s11 + $0x48] sm:$0xff]  ;;  %3690 = vmatpush3.bf16.msra.mxu1 %v4799_v26 }
 0x14e   : > { %v1663_v7 = vpop.permute.xlu1 %1662  ;;  %v3631_v54 = vpack.c.bf16 %v2095_v44, %v2094_v0 }
 0x14f   : > { %v1702_v59 = vmul.f32 %v4513_v57, %v1663_v7  ;;  %v1470_v34 = vadd.f32 %v1438_v11, %v1201_v29 }
 0x150   : > { %v1658_v36 = vpop.permute.xlu0 %1657  ;;  %3632 = vmatprep.subr.bf16.mxu0 %v3631_v54 }
 0x151   : > { %v1701_v45 = vmul.f32 %v4513_v57, %v1658_v36  ;;  %v1734_v1 = vadd.f32 %v1702_v59, %v1471_v58  ;;  %3634 = vmatpush3.bf16.msra.mxu0 %v3631_v54  ;;  %v2096_v57 = vld [vmem:[%s5093_s11 + $0x50] sm:$0xff] }
 0x152   : > { %v3635_v19 = vpack.c.bf16 %v2097_v53, %v2096_v57 }
 0x153   : > { %v1733_v35 = vadd.f32 %v1701_v45, %v1470_v34  ;;  %v3763_v31 = vpop.eup %3762  ;;  %v1773_v15 = vadd.f32 %v4532_v2, %v1734_v1 }
 0x154   : > { %3409 = vmatprep.mubr.f32.mxu1 %v3763_v31  ;;  %3636 = vmatprep.subr.bf16.mxu0 %v3635_v19 }
 0x155   : > { %v1772_v41 = vadd.f32 %v4532_v2, %v1733_v35  ;;  %3766 = vtanh.f32 %v1773_v15  ;;  %3638 = vmatpush3.bf16.msra.mxu0 %v3635_v19  ;;  %v2098_v2 = vld [vmem:[%s5093_s11 + $0x60] sm:$0xff] }
 0x156   : > { %v3639_v18 = vpack.c.bf16 %v2099_v42, %v2098_v2 }
 0x157   : > { %3768 = vtanh.f32 %v1772_v41  ;;  %v3765_v8 = vpop.eup %3764 }
 0x158   : > { %3410 = vmatmul.mubr.f32.gmra.mrb[28].mxu1 %v3765_v8  ;;  %3640 = vmatprep.subr.bf16.mxu0 %v3639_v18 }
 0x159   : > { %3642 = vmatpush3.bf16.msra.mxu0 %v3639_v18 }
 0x15a   : > { %3644 = vmatprep.subr.bf16.mxu0 %v3643_v3 }
 0x15d   : > { %3646 = vmatpush3.bf16.msra.mxu0 %v3643_v3 }
 0x15e   : > { %3648 = vmatprep.subr.bf16.mxu0 %v3647_v25 }
 0x15f   : > { %v3767_v6 = vpop.eup %3766 }
 0x161   : > { %v3769_v50 = vpop.eup %3768 }
 0x162   : > { %3412 = vmatprep.mubr.f32.mxu1 %v3769_v50 }
 0x163   : > { %3413 = vmatmul.mubr.f32.gmra.mrb[30].mxu1 %v3767_v6 }
 0x1d2   : > { %v3369_v46 = vpop.f32.mrb[0].mxu1 }
 0x1d3   : > { %v1901_v47 = vadd.f32 %v3369_v46, %v4797_v56  ;;  %v1895_v27 = vpop.f32.mrb[1].mxu1 }
 0x1d4   : > { %v1896_v37 = vadd.f32 %v4797_v56, %v1895_v27 }
 0x1d6   : > { %3770 = vtanh.f32 %v1896_v37  ;;  %v3372_v14 = vpop.f32.mrb[2].mxu1 }
 0x1d7   : > { %3772 = vtanh.f32 %v1901_v47  ;;  %v1911_v30 = vadd.f32 %v3372_v14, %v4797_v56  ;;  %v1905_v55 = vpop.f32.mrb[3].mxu1 }
 0x1d8   : > { %v1906_v40 = vadd.f32 %v4797_v56, %v1905_v55 }
 0x1da   : > { %3774 = vtanh.f32 %v1906_v40  ;;  %v3375_v48 = vpop.f32.mrb[4].mxu1 }
 0x1db   : > { %3776 = vtanh.f32 %v1911_v30  ;;  %v1921_v49 = vadd.f32 %v3375_v48, %v4797_v56  ;;  %v1915_v62 = vpop.f32.mrb[5].mxu1 }
 0x1dc   : > { %v1916_v21 = vadd.f32 %v4797_v56, %v1915_v62 }
 0x1de   : > { %3778 = vtanh.f32 %v1916_v21  ;;  %v3378_v22 = vpop.f32.mrb[6].mxu1 }
 0x1df   : > { %3780 = vtanh.f32 %v1921_v49  ;;  %v1931_v16 = vadd.f32 %v3378_v22, %v4797_v56  ;;  %v1925_v24 = vpop.f32.mrb[7].mxu1 }
 0x1e0   : > { %v3771_v38 = vpop.eup %3770  ;;  %v1926_v52 = vadd.f32 %v4797_v56, %v1925_v24 }
 0x1e1   : > { %v3773_v10 = vpop.eup %3772  ;;  %3447 = vmatprep.mubr.f32.mxu0 %v3771_v38 }
 0x1e2   : > { %3782 = vtanh.f32 %v1926_v52  ;;  %v3381_v60 = vpop.f32.mrb[8].mxu1  ;;  %3448 = vmatmul.mubr.f32.vlgmr.msra.gmra.mrb[32].mxu0 %v3773_v10 }
 0x1e3   : > { %3784 = vtanh.f32 %v1931_v16  ;;  %v1941_v23 = vadd.f32 %v3381_v60, %v4797_v56  ;;  %v1935_v20 = vpop.f32.mrb[9].mxu1  ;;  %3650 = vmatpush3.bf16.msra.mxu0 %v3647_v25 }
 0x1e4   : > { %v3775_v63 = vpop.eup %3774  ;;  %v1936_v11 = vadd.f32 %v4797_v56, %v1935_v20  ;;  %3652 = vmatprep.subr.bf16.mxu0 %v3651_v4 }
 0x1e5   : > { %v3777_v39 = vpop.eup %3776  ;;  %3450 = vmatprep.mubr.f32.mxu0 %v3775_v63 }
 0x1e6   : > { %3786 = vtanh.f32 %v1936_v11  ;;  %3451 = vmatmul.mubr.f32.gmra.mrb[34].mxu0 %v3777_v39 }
 0x1e7   : > { %v3384_v29 = vpop.f32.mrb[10].mxu1  ;;  %3788 = vtanh.f32 %v1941_v23  ;;  %3654 = vmatpush3.bf16.msra.mxu0 %v3651_v4 }
 0x1e8   : > { %v1951_v7 = vadd.f32 %v3384_v29, %v4797_v56  ;;  %v1945_v58 = vpop.f32.mrb[11].mxu1  ;;  %v3779_v59 = vpop.eup %3778  ;;  %3656 = vmatprep.subr.bf16.mxu0 %v4785_v33 }
 0x1e9   : > { %v1946_v36 = vadd.f32 %v4797_v56, %v1945_v58  ;;  %v3781_v34 = vpop.eup %3780  ;;  %3453 = vmatprep.mubr.f32.mxu0 %v3779_v59  ;;  %v2375_v58 = vld [vmem:[%s5095_s13 + $0x48] sm:$0xff] }
 0x1ea   : > { %3454 = vmatmul.mubr.f32.gmra.mrb[36].mxu0 %v3781_v34 }
 0x1eb   : > { %3790 = vtanh.f32 %v1946_v36  ;;  %v3387_v45 = vpop.f32.mrb[12].mxu1  ;;  %3658 = vmatpush3.bf16.msra.mxu0 %v4785_v33 }
 0x1ec   : > { %3792 = vtanh.f32 %v1951_v7  ;;  %v1961_v0 = vadd.f32 %v3387_v45, %v4797_v56  ;;  %v1955_v44 = vpop.f32.mrb[13].mxu1  ;;  %v3783_v1 = vpop.eup %3782  ;;  %3660 = vmatprep.subr.bf16.mxu0 %v4799_v26  ;;  %v2374_v7 = vld [vmem:[%s5095_s13 + $0x40] sm:$0xff] }
 0x1ed   : > { %v1956_v54 = vadd.f32 %v4797_v56, %v1955_v44  ;;  %v3785_v35 = vpop.eup %3784  ;;  %3456 = vmatprep.mubr.f32.mxu0 %v3783_v1  ;;  %v3663_v59 = vpack.c.bf16 %v2375_v58, %v2374_v7  ;;  %v2376_v44 = vld [vmem:[%s5095_s13 + $0x50] sm:$0xff]  ;;  %v2377_v1 = vld [vmem:[%s5095_s13 + $0x58] sm:$0xff] }
 0x1ee   : > { %3457 = vmatmul.mubr.f32.gmra.mrb[38].mxu0 %v3785_v35 }
 0x1ef   : > { %3794 = vtanh.f32 %v1956_v54  ;;  %v3390_v31 = vpop.f32.mrb[14].mxu1  ;;  %3662 = vmatpush3.bf16.msra.mxu0 %v4799_v26  ;;  %3683 = vmatprep.subr.bf16.mxu1 %v3663_v59  ;;  %v3667_v54 = vpack.c.bf16 %v2377_v1, %v2376_v44 }
 0x1f0   : > { %3796 = vtanh.f32 %v1961_v0  ;;  %v1971_v15 = vadd.f32 %v3390_v31, %v4797_v56  ;;  %v1965_v41 = vpop.f32.mrb[15].mxu1  ;;  %v3787_v57 = vpop.eup %3786  ;;  %3664 = vmatprep.subr.bf16.mxu0 %v3663_v59  ;;  %3691 = vmatpush3.bf16.msra.mxu1 %v3663_v59 }
 0x1f1   : > { %v1966_v53 = vadd.f32 %v4797_v56, %v1965_v41  ;;  %v3789_v19 = vpop.eup %3788  ;;  %3459 = vmatprep.mubr.f32.mxu0 %v3787_v57  ;;  %3684 = vmatprep.subr.bf16.mxu1 %v3667_v54  ;;  %v2380_v57 = vld [vmem:[%s5095_s13 + $0x70] sm:$0xff] }
 0x1f2   : > { %3460 = vmatmul.mubr.f32.gmra.mrb[40].mxu0 %v3789_v19 }
 0x1f3   : > { %3798 = vtanh.f32 %v1966_v53  ;;  %v3393_v8 = vpop.f32.mrb[16].mxu1  ;;  %3666 = vmatpush3.bf16.msra.mxu0 %v3663_v59  ;;  %v2381_v53 = vld [vmem:[%s5095_s13 + $0x78] sm:$0xff] }
 0x1f4   : > { %3800 = vtanh.f32 %v1971_v15  ;;  %v1981_v2 = vadd.f32 %v3393_v8, %v4797_v56  ;;  %v1975_v42 = vpop.f32.mrb[17].mxu1  ;;  %3668 = vmatprep.subr.bf16.mxu0 %v3667_v54  ;;  %v2379_v15 = vld [vmem:[%s5095_s13 + $0x68] sm:$0xff]  ;;  %3692 = vmatpush3.bf16.msra.mxu1 %v3667_v54  ;;  %v3675_v19 = vpack.c.bf16 %v2381_v53, %v2380_v57 }
 0x1f5   : > { %v3791_v18 = vpop.eup %3790  ;;  %v1976_v17 = vadd.f32 %v4797_v56, %v1975_v42  ;;  %v4867_v42 = vld [vmem:[%s5094_s12] ss:$0 sm:$0xff] }
 0x1f6   : > { %v3793_v43 = vpop.eup %3792  ;;  %3462 = vmatprep.mubr.f32.mxu0 %v3791_v18 }
 0x1f7   : > { %3802 = vtanh.f32 %v1976_v17  ;;  %v3396_v3 = vpop.f32.mrb[18].mxu1  ;;  %3463 = vmatmul.mubr.f32.gmra.mrb[42].mxu0 %v3793_v43 }
 0x1f8   : > { %3804 = vtanh.f32 %v1981_v2  ;;  %v1991_v6 = vadd.f32 %v3396_v3, %v4797_v56  ;;  %v1985_v50 = vpop.f32.mrb[19].mxu1  ;;  %3670 = vmatpush3.bf16.msra.mxu0 %v3667_v54 }
 0x1f9   : > { %v3795_v9 = vpop.eup %3794  ;;  %v1986_v28 = vadd.f32 %v4797_v56, %v1985_v50 }
 0x1fa   : > { %v3797_v61 = vpop.eup %3796  ;;  %3465 = vmatprep.mubr.f32.mxu0 %v3795_v9 }
 0x1fb   : > { %3806 = vtanh.f32 %v1986_v28  ;;  %3466 = vmatmul.mubr.f32.gmra.mrb[44].mxu0 %v3797_v61  ;;  %v3399_v25 = vpop.f32.mrb[20].mxu1 }
 0x1fc   : > { %3808 = vtanh.f32 %v1991_v6  ;;  %v2001_v4 = vadd.f32 %v3399_v25, %v4797_v56  ;;  %v1995_v5 = vpop.f32.mrb[21].mxu1 }
 0x1fd   : > { %v3799_v51 = vpop.eup %3798  ;;  %v1996_v33 = vadd.f32 %v4797_v56, %v1995_v5 }
 0x1fe   : > { %v3801_v32 = vpop.eup %3800  ;;  %3468 = vmatprep.mubr.f32.mxu0 %v3799_v51 }
 0x1ff   : > { %3469 = vmatmul.mubr.f32.gmra.mrb[46].mxu0 %v3801_v32  ;;  %3810 = vtanh.f32 %v1996_v33 }
 0x200   : > { %3812 = vtanh.f32 %v2001_v4 }
 0x201   : > { %v3803_v12 = vpop.eup %3802 }
 0x202   : > { %v3805_v13 = vpop.eup %3804  ;;  %3471 = vmatprep.mubr.f32.mxu0 %v3803_v12 }
 0x203   : > { %3472 = vmatmul.mubr.f32.gmra.mrb[48].mxu0 %v3805_v13 }
 0x205   : > { %v3807_v26 = vpop.eup %3806 }
 0x206   : > { %v3809_v46 = vpop.eup %3808  ;;  %3474 = vmatprep.mubr.f32.mxu0 %v3807_v26 }
 0x207   : > { %3475 = vmatmul.mubr.f32.gmra.mrb[50].mxu0 %v3809_v46  ;;  %v3402_v47 = vpop.f32.mrb[22].mxu1 }
 0x208   : > { %v2011_v27 = vadd.f32 %v3402_v47, %v4797_v56  ;;  %v2005_v37 = vpop.f32.mrb[23].mxu1 }
 0x209   : > { %v3811_v14 = vpop.eup %3810  ;;  %v2006_v30 = vadd.f32 %v4797_v56, %v2005_v37 }
 0x20a   : > { %v3813_v55 = vpop.eup %3812  ;;  %3477 = vmatprep.mubr.f32.mxu0 %v3811_v14 }
 0x20b   : > { %3814 = vtanh.f32 %v2006_v30  ;;  %3478 = vmatmul.mubr.f32.gmra.mrb[52].mxu0 %v3813_v55 }
 0x20c   : > { %3816 = vtanh.f32 %v2011_v27 }
 0x213   : > { %v3405_v40 = vpop.f32.mrb[24].mxu1 }
 0x214   : > { %v2021_v48 = vadd.f32 %v3405_v40, %v4797_v56  ;;  %v2015_v49 = vpop.f32.mrb[25].mxu1 }
 0x215   : > { %v3815_v62 = vpop.eup %3814  ;;  %v2016_v21 = vadd.f32 %v4797_v56, %v2015_v49 }
 0x216   : > { %v3817_v22 = vpop.eup %3816  ;;  %3480 = vmatprep.mubr.f32.mxu0 %v3815_v62 }
 0x217   : > { %3818 = vtanh.f32 %v2016_v21  ;;  %3481 = vmatmul.mubr.f32.gmra.mrb[54].mxu0 %v3817_v22 }
 0x218   : > { %3820 = vtanh.f32 %v2021_v48 }
 0x21f   : > { %v3408_v16 = vpop.f32.mrb[26].mxu1 }
 0x220   : > { %v2031_v24 = vadd.f32 %v3408_v16, %v4797_v56  ;;  %v2025_v38 = vpop.f32.mrb[27].mxu1 }
 0x221   : > { %v3819_v52 = vpop.eup %3818  ;;  %v2026_v10 = vadd.f32 %v4797_v56, %v2025_v38 }
 0x222   : > { %v3821_v60 = vpop.eup %3820  ;;  %3483 = vmatprep.mubr.f32.mxu0 %v3819_v52 }
 0x223   : > { %3822 = vtanh.f32 %v2026_v10  ;;  %3484 = vmatmul.mubr.f32.gmra.mrb[56].mxu0 %v3821_v60 }
 0x224   : > { %3824 = vtanh.f32 %v2031_v24 }
 0x22b   : > { %v3411_v23 = vpop.f32.mrb[28].mxu1 }
 0x22c   : > { %v2041_v20 = vadd.f32 %v3411_v23, %v4797_v56  ;;  %v2035_v63 = vpop.f32.mrb[29].mxu1 }
 0x22d   : > { %v3823_v11 = vpop.eup %3822  ;;  %v2036_v39 = vadd.f32 %v4797_v56, %v2035_v63 }
 0x22e   : > { %v3825_v29 = vpop.eup %3824  ;;  %3486 = vmatprep.mubr.f32.mxu0 %v3823_v11 }
 0x22f   : > { %3826 = vtanh.f32 %v2036_v39  ;;  %3487 = vmatmul.mubr.f32.gmra.mrb[58].mxu0 %v3825_v29 }
 0x230   : > { %3828 = vtanh.f32 %v2041_v20 }
 0x236   : > { %v3414_v36 = vpop.f32.mrb[30].mxu1 }
 0x237   : > { %v2051_v34 = vadd.f32 %v3414_v36, %v4797_v56  ;;  %v2045_v45 = vpop.f32.mrb[31].mxu1 }
 0x238   : > { %v2046_v0 = vadd.f32 %v4797_v56, %v2045_v45  ;;  %v2378_v56 = vld [vmem:[%s5095_s13 + $0x60] sm:$0xff] }
 0x239   : > { %v3827_v35 = vpop.eup %3826  ;;  %v3671_v41 = vpack.c.bf16 %v2379_v15, %v2378_v56 }
 0x23a   : > { %3830 = vtanh.f32 %v2046_v0  ;;  %v3829_v31 = vpop.eup %3828  ;;  %3489 = vmatprep.mubr.f32.mxu0 %v3827_v35 }
 0x23b   : > { %3832 = vtanh.f32 %v2051_v34  ;;  %3490 = vmatmul.mubr.f32.gmra.mrb[60].mxu0 %v3829_v31  ;;  %3672 = vmatprep.subr.bf16.mxu0 %v3671_v41 }
 0x23c   : > { %3685 = vmatprep.subr.bf16.mxu1 %v3671_v41  ;;  %3674 = vmatpush3.bf16.msra.mxu0 %v3671_v41 }
 0x23d   : > { %3693 = vmatpush3.bf16.msra.mxu1 %v3671_v41  ;;  %3676 = vmatprep.subr.bf16.mxu0 %v3675_v19 }
 0x23e   : > { %3686 = vmatprep.subr.bf16.mxu1 %v3675_v19 }
 0x240   : > { %3678 = vmatpush3.bf16.msra.mxu0 %v3675_v19 }
 0x241   : > { %3694 = vmatpush3.bf16.msra.mxu1 %v3675_v19 }
 0x244   : > { %v3831_v8 = vpop.eup %3830 }
 0x245   : > { %v3833_v2 = vpop.eup %3832  ;;  %3492 = vmatprep.mubr.f32.mxu0 %v3831_v8 }
 0x246   : > { %3493 = vmatmul.mubr.f32.gmra.mrb[62].mxu0 %v3833_v2 }
 0x2b5   : > { %v3449_v18 = vpop.f32.mrb[32].mxu0 }
 0x2b6   : > { %v2181_v17 = vadd.f32 %v3449_v18, %v4867_v42  ;;  %v2175_v43 = vpop.f32.mrb[33].mxu0 }
 0x2b7   : > { %v2176_v3 = vadd.f32 %v4867_v42, %v2175_v43 }
 0x2b9   : > { %3834 = vtanh.f32 %v2176_v3  ;;  %v3452_v6 = vpop.f32.mrb[34].mxu0 }
 0x2ba   : > { %3836 = vtanh.f32 %v2181_v17  ;;  %v2191_v50 = vadd.f32 %v3452_v6, %v4867_v42  ;;  %v2185_v9 = vpop.f32.mrb[35].mxu0 }
 0x2bb   : > { %v2186_v28 = vadd.f32 %v4867_v42, %v2185_v9 }
 0x2bd   : > { %3838 = vtanh.f32 %v2186_v28  ;;  %v3455_v61 = vpop.f32.mrb[36].mxu0 }
 0x2be   : > { %3840 = vtanh.f32 %v2191_v50  ;;  %v2201_v25 = vadd.f32 %v3455_v61, %v4867_v42  ;;  %v2195_v51 = vpop.f32.mrb[37].mxu0 }
 0x2bf   : > { %v2196_v4 = vadd.f32 %v4867_v42, %v2195_v51 }
 0x2c1   : > { %3842 = vtanh.f32 %v2196_v4  ;;  %v3458_v5 = vpop.f32.mrb[38].mxu0 }
 0x2c2   : > { %3844 = vtanh.f32 %v2201_v25  ;;  %v2211_v32 = vadd.f32 %v3458_v5, %v4867_v42  ;;  %v2205_v33 = vpop.f32.mrb[39].mxu0 }
 0x2c3   : > { %v3835_v12 = vpop.eup %3834  ;;  %v2206_v13 = vadd.f32 %v4867_v42, %v2205_v33 }
 0x2c4   : > { %v3837_v26 = vpop.eup %3836  ;;  %3527 = vmatprep.mubr.f32.mxu0 %v3835_v12 }
 0x2c5   : > { %3846 = vtanh.f32 %v2206_v13  ;;  %v3461_v46 = vpop.f32.mrb[40].mxu0  ;;  %3528 = vmatmul.mubr.f32.vlgmr.msra.gmra.mrb[64].mxu0 %v3837_v26 }
 0x2c6   : > { %3848 = vtanh.f32 %v2211_v32  ;;  %v2221_v47 = vadd.f32 %v3461_v46, %v4867_v42  ;;  %v2215_v27 = vpop.f32.mrb[41].mxu0 }
 0x2c7   : > { %v3839_v37 = vpop.eup %3838  ;;  %v2216_v14 = vadd.f32 %v4867_v42, %v2215_v27 }
 0x2c8   : > { %v3841_v30 = vpop.eup %3840  ;;  %3530 = vmatprep.mubr.f32.mxu0 %v3839_v37 }
 0x2c9   : > { %3850 = vtanh.f32 %v2216_v14  ;;  %3531 = vmatmul.mubr.f32.gmra.mrb[66].mxu0 %v3841_v30 }
 0x2ca   : > { %v3464_v55 = vpop.f32.mrb[42].mxu0  ;;  %3852 = vtanh.f32 %v2221_v47 }
 0x2cb   : > { %v2231_v40 = vadd.f32 %v3464_v55, %v4867_v42  ;;  %v2225_v48 = vpop.f32.mrb[43].mxu0  ;;  %v3843_v49 = vpop.eup %3842 }
 0x2cc   : > { %v2226_v62 = vadd.f32 %v4867_v42, %v2225_v48  ;;  %v3845_v21 = vpop.eup %3844  ;;  %3533 = vmatprep.mubr.f32.mxu0 %v3843_v49 }
 0x2cd   : > { %3534 = vmatmul.mubr.f32.gmra.mrb[68].mxu0 %v3845_v21 }
 0x2ce   : > { %3854 = vtanh.f32 %v2226_v62  ;;  %v3467_v22 = vpop.f32.mrb[44].mxu0 }
 0x2cf   : > { %3856 = vtanh.f32 %v2231_v40  ;;  %v2241_v16 = vadd.f32 %v3467_v22, %v4867_v42  ;;  %v2235_v24 = vpop.f32.mrb[45].mxu0  ;;  %v3847_v38 = vpop.eup %3846 }
 0x2d0   : > { %v2236_v52 = vadd.f32 %v4867_v42, %v2235_v24  ;;  %v3849_v10 = vpop.eup %3848  ;;  %3536 = vmatprep.mubr.f32.mxu1 %v3847_v38  ;;  %v4904_v38 = vld [vmem:[%s5096_s14] ss:$0 sm:$0xff] }
 0x2d1   : > { %3537 = vmatmul.mubr.f32.vlgmr.msra.gmra.mrb[32].mxu1 %v3849_v10 }
 0x2d2   : > { %3858 = vtanh.f32 %v2236_v52  ;;  %v3470_v60 = vpop.f32.mrb[46].mxu0 }
 0x2d3   : > { %3860 = vtanh.f32 %v2241_v16  ;;  %v2251_v23 = vadd.f32 %v3470_v60, %v4867_v42  ;;  %v2245_v20 = vpop.f32.mrb[47].mxu0  ;;  %v3851_v63 = vpop.eup %3850 }
 0x2d4   : > { %v2246_v11 = vadd.f32 %v4867_v42, %v2245_v20  ;;  %v3853_v39 = vpop.eup %3852  ;;  %3539 = vmatprep.mubr.f32.mxu1 %v3851_v63 }
 0x2d5   : > { %3540 = vmatmul.mubr.f32.gmra.mrb[34].mxu1 %v3853_v39 }
 0x2d6   : > { %3862 = vtanh.f32 %v2246_v11  ;;  %v3473_v29 = vpop.f32.mrb[48].mxu0 }
 0x2d7   : > { %3864 = vtanh.f32 %v2251_v23  ;;  %v2261_v7 = vadd.f32 %v3473_v29, %v4867_v42  ;;  %v2255_v58 = vpop.f32.mrb[49].mxu0 }
 0x2d8   : > { %v3855_v59 = vpop.eup %3854  ;;  %v2256_v36 = vadd.f32 %v4867_v42, %v2255_v58 }
 0x2d9   : > { %v3857_v34 = vpop.eup %3856  ;;  %3542 = vmatprep.mubr.f32.mxu1 %v3855_v59  ;;  %v4915_v59 = vld [vmem:[%s5097_s15] ss:$0 sm:$0xff] }
 0x2da   : > { %3866 = vtanh.f32 %v2256_v36  ;;  %v3476_v45 = vpop.f32.mrb[50].mxu0  ;;  %3543 = vmatmul.mubr.f32.gmra.mrb[36].mxu1 %v3857_v34 }
 0x2db   : > { %3868 = vtanh.f32 %v2261_v7  ;;  %v2271_v0 = vadd.f32 %v3476_v45, %v4867_v42  ;;  %v2265_v44 = vpop.f32.mrb[51].mxu0 }
 0x2dc   : > { %v3859_v1 = vpop.eup %3858  ;;  %v2266_v54 = vadd.f32 %v4867_v42, %v2265_v44 }
 0x2dd   : > { %v3861_v35 = vpop.eup %3860  ;;  %3545 = vmatprep.mubr.f32.mxu1 %v3859_v1 }
 0x2de   : > { %3870 = vtanh.f32 %v2266_v54  ;;  %3546 = vmatmul.mubr.f32.gmra.mrb[38].mxu1 %v3861_v35  ;;  %v3479_v31 = vpop.f32.mrb[52].mxu0 }
 0x2df   : > { %3872 = vtanh.f32 %v2271_v0  ;;  %v2281_v15 = vadd.f32 %v3479_v31, %v4867_v42  ;;  %v2275_v41 = vpop.f32.mrb[53].mxu0 }
 0x2e0   : > { %v3863_v56 = vpop.eup %3862  ;;  %v2276_v53 = vadd.f32 %v4867_v42, %v2275_v41 }
 0x2e1   : > { %v3865_v57 = vpop.eup %3864  ;;  %3548 = vmatprep.mubr.f32.mxu1 %v3863_v56 }
 0x2e2   : > { %3549 = vmatmul.mubr.f32.gmra.mrb[40].mxu1 %v3865_v57  ;;  %3874 = vtanh.f32 %v2276_v53 }
 0x2e3   : > { %3876 = vtanh.f32 %v2281_v15 }
 0x2e4   : > { %v3867_v19 = vpop.eup %3866 }
 0x2e5   : > { %v3869_v8 = vpop.eup %3868  ;;  %3551 = vmatprep.mubr.f32.mxu1 %v3867_v19 }
 0x2e6   : > { %3552 = vmatmul.mubr.f32.gmra.mrb[42].mxu1 %v3869_v8 }
 0x2e8   : > { %v3871_v2 = vpop.eup %3870 }
 0x2e9   : > { %v3873_v18 = vpop.eup %3872  ;;  %3554 = vmatprep.mubr.f32.mxu1 %v3871_v2 }
 0x2ea   : > { %3555 = vmatmul.mubr.f32.gmra.mrb[44].mxu1 %v3873_v18  ;;  %v3482_v17 = vpop.f32.mrb[54].mxu0 }
 0x2eb   : > { %v2291_v43 = vadd.f32 %v3482_v17, %v4867_v42  ;;  %v2285_v3 = vpop.f32.mrb[55].mxu0 }
 0x2ec   : > { %v3875_v6 = vpop.eup %3874  ;;  %v2286_v50 = vadd.f32 %v4867_v42, %v2285_v3 }
 0x2ed   : > { %v3877_v9 = vpop.eup %3876  ;;  %3557 = vmatprep.mubr.f32.mxu1 %v3875_v6 }
 0x2ee   : > { %3878 = vtanh.f32 %v2286_v50  ;;  %3558 = vmatmul.mubr.f32.gmra.mrb[46].mxu1 %v3877_v9 }
 0x2ef   : > { %3880 = vtanh.f32 %v2291_v43 }
 0x2f6   : > { %v3485_v28 = vpop.f32.mrb[56].mxu0 }
 0x2f7   : > { %v2301_v61 = vadd.f32 %v3485_v28, %v4867_v42  ;;  %v2295_v25 = vpop.f32.mrb[57].mxu0 }
 0x2f8   : > { %v3879_v51 = vpop.eup %3878  ;;  %v2296_v4 = vadd.f32 %v4867_v42, %v2295_v25 }
 0x2f9   : > { %v3881_v5 = vpop.eup %3880  ;;  %3560 = vmatprep.mubr.f32.mxu1 %v3879_v51 }
 0x2fa   : > { %3882 = vtanh.f32 %v2296_v4  ;;  %3561 = vmatmul.mubr.f32.gmra.mrb[48].mxu1 %v3881_v5 }
 0x2fb   : > { %3884 = vtanh.f32 %v2301_v61 }
 0x302   : > { %v3488_v32 = vpop.f32.mrb[58].mxu0 }
 0x303   : > { %v2311_v33 = vadd.f32 %v3488_v32, %v4867_v42  ;;  %v2305_v12 = vpop.f32.mrb[59].mxu0 }
 0x304   : > { %v3883_v13 = vpop.eup %3882  ;;  %v2306_v26 = vadd.f32 %v4867_v42, %v2305_v12 }
 0x305   : > { %v3885_v46 = vpop.eup %3884  ;;  %3563 = vmatprep.mubr.f32.mxu1 %v3883_v13 }
 0x306   : > { %3886 = vtanh.f32 %v2306_v26  ;;  %3564 = vmatmul.mubr.f32.gmra.mrb[50].mxu1 %v3885_v46 }
 0x307   : > { %3888 = vtanh.f32 %v2311_v33 }
 0x30e   : > { %v3491_v47 = vpop.f32.mrb[60].mxu0 }
 0x30f   : > { %v2321_v27 = vadd.f32 %v3491_v47, %v4867_v42  ;;  %v2315_v37 = vpop.f32.mrb[61].mxu0 }
 0x310   : > { %v3887_v14 = vpop.eup %3886  ;;  %v2316_v30 = vadd.f32 %v4867_v42, %v2315_v37 }
 0x311   : > { %v3889_v55 = vpop.eup %3888  ;;  %3566 = vmatprep.mubr.f32.mxu1 %v3887_v14 }
 0x312   : > { %3890 = vtanh.f32 %v2316_v30  ;;  %3567 = vmatmul.mubr.f32.gmra.mrb[52].mxu1 %v3889_v55 }
 0x313   : > { %3892 = vtanh.f32 %v2321_v27 }
 0x319   : > { %v3494_v40 = vpop.f32.mrb[62].mxu0 }
 0x31a   : > { %v2331_v48 = vadd.f32 %v3494_v40, %v4867_v42  ;;  %v2325_v49 = vpop.f32.mrb[63].mxu0 }
 0x31b   : > { %v2326_v62 = vadd.f32 %v4867_v42, %v2325_v49 }
 0x31c   : > { %v3891_v21 = vpop.eup %3890 }
 0x31d   : > { %3894 = vtanh.f32 %v2326_v62  ;;  %v3893_v22 = vpop.eup %3892  ;;  %3569 = vmatprep.mubr.f32.mxu1 %v3891_v21 }
 0x31e   : > { %3896 = vtanh.f32 %v2331_v48  ;;  %3570 = vmatmul.mubr.f32.gmra.mrb[54].mxu1 %v3893_v22 }
 0x327   : > { %v3895_v16 = vpop.eup %3894 }
 0x328   : > { %v3897_v24 = vpop.eup %3896  ;;  %3572 = vmatprep.mubr.f32.mxu1 %v3895_v16 }
 0x329   : > { %3573 = vmatmul.mubr.f32.gmra.mrb[56].mxu1 %v3897_v24 }
 0x398   : > { %v3529_v52 = vpop.f32.mrb[64].mxu0 }
 0x399   : > { %v2461_v10 = vadd.f32 %v3529_v52, %v4904_v38  ;;  %v2455_v60 = vpop.f32.mrb[65].mxu0 }
 0x39a   : > { %v2456_v42 = vadd.f32 %v4904_v38, %v2455_v60 }
 0x39b   : > { %3898 = vtanh.f32 %v2461_v10 }
 0x39c   : > { %3900 = vtanh.f32 %v2456_v42  ;;  %v3532_v23 = vpop.f32.mrb[66].mxu0 }
 0x39d   : > { %v2471_v20 = vadd.f32 %v3532_v23, %v4904_v38  ;;  %v2465_v63 = vpop.f32.mrb[67].mxu0 }
 0x39e   : > { %v2466_v11 = vadd.f32 %v4904_v38, %v2465_v63 }
 0x39f   : > { %3902 = vtanh.f32 %v2471_v20 }
 0x3a0   : > { %v3535_v39 = vpop.f32.mrb[68].mxu0  ;;  %3904 = vtanh.f32 %v2466_v11 }
 0x3a1   : > { %v2475_v29 = vpop.f32.mrb[69].mxu0  ;;  %v2481_v7 = vadd.f32 %v3535_v39, %v4904_v38 }
 0x3a2   : > { %v2476_v58 = vadd.f32 %v4904_v38, %v2475_v29 }
 0x3a4   : > { %3906 = vtanh.f32 %v2476_v58  ;;  %v3538_v36 = vpop.f32.mrb[32].mxu1 }
 0x3a5   : > { %v3899_v34 = vpop.eup %3898  ;;  %v2485_v45 = vpop.f32.mrb[33].mxu1  ;;  %3908 = vtanh.f32 %v2481_v7  ;;  %v2491_v44 = vadd.f32 %v3538_v36, %v4904_v38 }
 0x3a6   : > { %v3901_v0 = vpop.eup %3900  ;;  %v2486_v1 = vadd.f32 %v4904_v38, %v2485_v45  ;;  %v2654_v54 = vmul.f32 %v3899_v34, %v4915_v59 }
 0x3a7   : > { %v2653_v35 = vmul.f32 %v3901_v0, %v4915_v59 }
 0x3a8   : > { %3910 = vtanh.f32 %v2486_v1  ;;  %v3541_v31 = vpop.f32.mrb[34].mxu1  ;;  %2687 = vadd.xlane.f32.xlu1 %v2654_v54 }
 0x3a9   : > { %v3903_v56 = vpop.eup %3902  ;;  %v2495_v15 = vpop.f32.mrb[35].mxu1  ;;  %2685 = vadd.xlane.f32.xlu0 %v2653_v35  ;;  %3912 = vtanh.f32 %v2491_v44  ;;  %v2501_v41 = vadd.f32 %v3541_v31, %v4904_v38 }
 0x3aa   : > { %v2496_v57 = vadd.f32 %v4904_v38, %v2495_v15  ;;  %v2656_v53 = vmul.f32 %v3903_v56, %v4915_v59  ;;  %v3905_v19 = vpop.eup %3904 }
 0x3ab   : > { %v2655_v6 = vmul.f32 %v3905_v19, %v4915_v59 }
 0x3ac   : > { %3914 = vtanh.f32 %v2496_v57 }
 0x3ad   : > { %v3544_v8 = vpop.f32.mrb[36].mxu1  ;;  %2691 = vadd.xlane.f32.xlu0 %v2656_v53  ;;  %3916 = vtanh.f32 %v2501_v41 }
 0x3ae   : > { %v2505_v2 = vpop.f32.mrb[37].mxu1  ;;  %v3907_v18 = vpop.eup %3906  ;;  %v2511_v17 = vadd.f32 %v3544_v8, %v4904_v38 }
 0x3af   : > { %v2506_v43 = vadd.f32 %v4904_v38, %v2505_v2  ;;  %v2657_v3 = vmul.f32 %v3907_v18, %v4915_v59  ;;  %v3909_v50 = vpop.eup %3908 }
 0x3b0   : > { %v2658_v5 = vmul.f32 %v3909_v50, %v4915_v59 }
 0x3b1   : > { %3918 = vtanh.f32 %v2506_v43  ;;  %v3547_v9 = vpop.f32.mrb[38].mxu1  ;;  %2693 = vadd.xlane.f32.xlu1 %v2657_v3  ;;  %2689 = vadd.xlane.f32.xlu0 %v2655_v6 }
 0x3b2   : > { %v2515_v28 = vpop.f32.mrb[39].mxu1  ;;  %v3911_v61 = vpop.eup %3910  ;;  %3920 = vtanh.f32 %v2511_v17  ;;  %v2521_v25 = vadd.f32 %v3547_v9, %v4904_v38 }
 0x3b3   : > { %v2516_v51 = vadd.f32 %v4904_v38, %v2515_v28  ;;  %v2659_v4 = vmul.f32 %v3911_v61, %v4915_v59  ;;  %v3913_v32 = vpop.eup %3912 }
 0x3b4   : > { %v2660_v27 = vmul.f32 %v3913_v32, %v4915_v59 }
 0x3b5   : > { %3922 = vtanh.f32 %v2516_v51  ;;  %v3550_v33 = vpop.f32.mrb[40].mxu1  ;;  %2697 = vadd.xlane.f32.xlu1 %v2659_v4  ;;  %2695 = vadd.xlane.f32.xlu0 %v2658_v5 }
 0x3b6   : > { %v2525_v12 = vpop.f32.mrb[41].mxu1  ;;  %v3915_v13 = vpop.eup %3914  ;;  %3924 = vtanh.f32 %v2521_v25  ;;  %v2531_v26 = vadd.f32 %v3550_v33, %v4904_v38 }
 0x3b7   : > { %v2526_v46 = vadd.f32 %v4904_v38, %v2525_v12  ;;  %v2661_v47 = vmul.f32 %v3915_v13, %v4915_v59  ;;  %v3917_v37 = vpop.eup %3916 }
 0x3b8   : > { %v2662_v62 = vmul.f32 %v3917_v37, %v4915_v59 }
 0x3b9   : > { %3926 = vtanh.f32 %v2526_v46  ;;  %v3553_v14 = vpop.f32.mrb[42].mxu1  ;;  %2701 = vadd.xlane.f32.xlu1 %v2661_v47  ;;  %2699 = vadd.xlane.f32.xlu0 %v2660_v27 }
 0x3ba   : > { %v2535_v30 = vpop.f32.mrb[43].mxu1  ;;  %3928 = vtanh.f32 %v2531_v26  ;;  %v2541_v40 = vadd.f32 %v3553_v14, %v4904_v38 }
 0x3bb   : > { %v3919_v55 = vpop.eup %3918  ;;  %v2536_v48 = vadd.f32 %v4904_v38, %v2535_v30 }
 0x3bc   : > { %v2663_v49 = vmul.f32 %v3919_v55, %v4915_v59  ;;  %v3921_v21 = vpop.eup %3920 }
 0x3bd   : > { %3930 = vtanh.f32 %v2536_v48  ;;  %v3556_v22 = vpop.f32.mrb[44].mxu1  ;;  %2703 = vadd.xlane.f32.xlu0 %v2662_v62  ;;  %v2664_v42 = vmul.f32 %v3921_v21, %v4915_v59 }
 0x3be   : > { %v2545_v16 = vpop.f32.mrb[45].mxu1  ;;  %2705 = vadd.xlane.f32.xlu1 %v2663_v49  ;;  %3932 = vtanh.f32 %v2541_v40  ;;  %v2551_v52 = vadd.f32 %v3556_v22, %v4904_v38 }
 0x3bf   : > { %v3923_v24 = vpop.eup %3922  ;;  %v2546_v10 = vadd.f32 %v4904_v38, %v2545_v16 }
 0x3c0   : > { %v2665_v60 = vmul.f32 %v3923_v24, %v4915_v59  ;;  %v3925_v23 = vpop.eup %3924 }
 0x3c1   : > { %3934 = vtanh.f32 %v2546_v10  ;;  %v3559_v20 = vpop.f32.mrb[46].mxu1  ;;  %2707 = vadd.xlane.f32.xlu0 %v2664_v42  ;;  %v2666_v58 = vmul.f32 %v3925_v23, %v4915_v59  ;;  %v4975_v23 = vld [vmem:[#allocation2] ss:$0 sm:$0xff] }
 0x3c2   : > { %2709 = vadd.xlane.f32.xlu1 %v2665_v60  ;;  %3936 = vtanh.f32 %v2551_v52  ;;  %v2561_v11 = vadd.f32 %v3559_v20, %v4904_v38  ;;  %v2555_v39 = vpop.f32.mrb[47].mxu1 }
 0x3c3   : > { %v3927_v63 = vpop.eup %3926  ;;  %v2556_v29 = vadd.f32 %v4904_v38, %v2555_v39 }
 0x3c4   : > { %v2667_v7 = vmul.f32 %v3927_v63, %v4915_v59  ;;  %v3929_v36 = vpop.eup %3928 }
 0x3c5   : > { %3938 = vtanh.f32 %v2556_v29  ;;  %2711 = vadd.xlane.f32.xlu0 %v2666_v58  ;;  %v2668_v0 = vmul.f32 %v3929_v36, %v4915_v59 }
 0x3c6   : > { %2713 = vadd.xlane.f32.xlu1 %v2667_v7  ;;  %3940 = vtanh.f32 %v2561_v11 }
 0x3c7   : > { %v3931_v34 = vpop.eup %3930 }
 0x3c8   : > { %v2669_v45 = vmul.f32 %v3931_v34, %v4915_v59  ;;  %v3933_v44 = vpop.eup %3932 }
 0x3c9   : > { %2715 = vadd.xlane.f32.xlu0 %v2668_v0  ;;  %v2670_v35 = vmul.f32 %v3933_v44, %v4915_v59 }
 0x3ca   : > { %2717 = vadd.xlane.f32.xlu1 %v2669_v45 }
 0x3cb   : > { %v3935_v1 = vpop.eup %3934 }
 0x3cc   : > { %v2671_v54 = vmul.f32 %v3935_v1, %v4915_v59  ;;  %v3937_v31 = vpop.eup %3936 }
 0x3cd   : > { %v3562_v56 = vpop.f32.mrb[48].mxu1  ;;  %2719 = vadd.xlane.f32.xlu0 %v2670_v35  ;;  %v2672_v19 = vmul.f32 %v3937_v31, %v4915_v59 }
 0x3ce   : > { %2721 = vadd.xlane.f32.xlu1 %v2671_v54  ;;  %v2571_v15 = vadd.f32 %v3562_v56, %v4904_v38  ;;  %v2565_v41 = vpop.f32.mrb[49].mxu1 }
 0x3cf   : > { %v3939_v57 = vpop.eup %3938  ;;  %v2566_v53 = vadd.f32 %v4904_v38, %v2565_v41 }
 0x3d0   : > { %v3941_v8 = vpop.eup %3940  ;;  %3942 = vtanh.f32 %v2571_v15  ;;  %v2673_v2 = vmul.f32 %v3939_v57, %v4915_v59 }
 0x3d1   : > { %3944 = vtanh.f32 %v2566_v53  ;;  %2723 = vadd.xlane.f32.xlu0 %v2672_v19  ;;  %v2674_v18 = vmul.f32 %v3941_v8, %v4915_v59 }
 0x3d2   : > { %2725 = vadd.xlane.f32.xlu1 %v2673_v2 }
 0x3d5   : > { %2727 = vadd.xlane.f32.xlu0 %v2674_v18 }
 0x3d9   : > { %v3565_v17 = vpop.f32.mrb[50].mxu1 }
 0x3da   : > { %v3943_v43 = vpop.eup %3942  ;;  %v2581_v3 = vadd.f32 %v3565_v17, %v4904_v38  ;;  %v2575_v6 = vpop.f32.mrb[51].mxu1 }
 0x3db   : > { %v3945_v50 = vpop.eup %3944  ;;  %v2576_v9 = vadd.f32 %v4904_v38, %v2575_v6  ;;  %v2676_v28 = vmul.f32 %v3943_v43, %v4915_v59 }
 0x3dc   : > { %3946 = vtanh.f32 %v2581_v3  ;;  %v2675_v61 = vmul.f32 %v3945_v50, %v4915_v59 }
 0x3dd   : > { %3948 = vtanh.f32 %v2576_v9  ;;  %2731 = vadd.xlane.f32.xlu0 %v2676_v28 }
 0x3de   : > { %2729 = vadd.xlane.f32.xlu1 %v2675_v61 }
 0x3e5   : > { %v3568_v25 = vpop.f32.mrb[52].mxu1 }
 0x3e6   : > { %v3947_v51 = vpop.eup %3946  ;;  %v2591_v4 = vadd.f32 %v3568_v25, %v4904_v38  ;;  %v2585_v5 = vpop.f32.mrb[53].mxu1 }
 0x3e7   : > { %v3949_v32 = vpop.eup %3948  ;;  %v2586_v33 = vadd.f32 %v4904_v38, %v2585_v5  ;;  %v2678_v12 = vmul.f32 %v3947_v51, %v4915_v59 }
 0x3e8   : > { %3950 = vtanh.f32 %v2591_v4  ;;  %v2677_v13 = vmul.f32 %v3949_v32, %v4915_v59 }
 0x3e9   : > { %3952 = vtanh.f32 %v2586_v33  ;;  %2735 = vadd.xlane.f32.xlu0 %v2678_v12 }
 0x3ea   : > { %2733 = vadd.xlane.f32.xlu1 %v2677_v13 }
 0x3f1   : > { %v3571_v26 = vpop.f32.mrb[54].mxu1 }
 0x3f2   : > { %v3951_v46 = vpop.eup %3950  ;;  %v2601_v47 = vadd.f32 %v3571_v26, %v4904_v38  ;;  %v2595_v27 = vpop.f32.mrb[55].mxu1 }
 0x3f3   : > { %v3953_v37 = vpop.eup %3952  ;;  %v2596_v14 = vadd.f32 %v4904_v38, %v2595_v27  ;;  %v2680_v30 = vmul.f32 %v3951_v46, %v4915_v59 }
 0x3f4   : > { %3954 = vtanh.f32 %v2601_v47  ;;  %v2679_v55 = vmul.f32 %v3953_v37, %v4915_v59 }
 0x3f5   : > { %3956 = vtanh.f32 %v2596_v14  ;;  %2739 = vadd.xlane.f32.xlu0 %v2680_v30 }
 0x3f6   : > { %2737 = vadd.xlane.f32.xlu1 %v2679_v55 }
 0x3fc   : > { %v3574_v40 = vpop.f32.mrb[56].mxu1 }
 0x3fd   : > { %v2611_v48 = vadd.f32 %v3574_v40, %v4904_v38  ;;  %v2605_v49 = vpop.f32.mrb[57].mxu1 }
 0x3fe   : > { %v2606_v62 = vadd.f32 %v4904_v38, %v2605_v49  ;;  %v3955_v21 = vpop.eup %3954 }
 0x3ff   : > { %3958 = vtanh.f32 %v2611_v48  ;;  %v3957_v22 = vpop.eup %3956  ;;  %v2682_v16 = vmul.f32 %v3955_v21, %v4915_v59 }
 0x400   : > { %3960 = vtanh.f32 %v2606_v62  ;;  %v2681_v24 = vmul.f32 %v3957_v22, %v4915_v59 }
 0x401   : > { %2743 = vadd.xlane.f32.xlu0 %v2682_v16 }
 0x402   : > { %2741 = vadd.xlane.f32.xlu1 %v2681_v24 }
 0x409   : > { %v3959_v52 = vpop.eup %3958 }
 0x40a   : > { %v3961_v10 = vpop.eup %3960  ;;  %v2684_v60 = vmul.f32 %v3959_v52, %v4915_v59 }
 0x40b   : > { %v2683_v42 = vmul.f32 %v3961_v10, %v4915_v59 }
 0x40c   : > { %2747 = vadd.xlane.f32.xlu0 %v2684_v60 }
 0x40d   : > { %2745 = vadd.xlane.f32.xlu1 %v2683_v42 }
 0x435   : > { %v2688_v38 = vpop.xlane.xlu1 %2687 }
 0x436   : > { %v2757_v20 = vadd.f32 %v4975_v23, %v2688_v38  ;;  %v2686_v63 = vpop.xlane.xlu0 %2685 }
 0x437   : > { %v2756_v11 = vadd.f32 %v4975_v23, %v2686_v63 }
 0x438   : > { %v2789_v39 = vmul.f32 0.5, %v2757_v20 }
 0x439   : > { %v2788_v29 = vmul.f32 0.5, %v2756_v11 }
 0x43a   : > { %3962 = vtanh.f32 %v2789_v39  ;;  %v2692_v7 = vpop.xlane.xlu0 %2691 }
 0x43b   : > { %3964 = vtanh.f32 %v2788_v29  ;;  %v2759_v58 = vadd.f32 %v4975_v23, %v2692_v7 }
 0x43d   : > { %v2791_v36 = vmul.f32 0.5, %v2759_v58 }
 0x43e   : > { %v2694_v34 = vpop.xlane.xlu1 %2693  ;;  %v2690_v59 = vpop.xlane.xlu0 %2689 }
 0x43f   : > { %3966 = vtanh.f32 %v2791_v36  ;;  %v2760_v45 = vadd.f32 %v4975_v23, %v2694_v34  ;;  %v2758_v0 = vadd.f32 %v4975_v23, %v2690_v59 }
 0x441   : > { %v2792_v44 = vmul.f32 0.5, %v2760_v45  ;;  %v2790_v1 = vmul.f32 0.5, %v2758_v0 }
 0x442   : > { %v2698_v54 = vpop.xlane.xlu1 %2697  ;;  %v2696_v35 = vpop.xlane.xlu0 %2695 }
 0x443   : > { %3968 = vtanh.f32 %v2792_v44  ;;  %v2762_v31 = vadd.f32 %v4975_v23, %v2698_v54  ;;  %v2761_v56 = vadd.f32 %v4975_v23, %v2696_v35 }
 0x444   : > { %v3963_v15 = vpop.eup %3962  ;;  %3970 = vtanh.f32 %v2790_v1 }
 0x445   : > { %v3965_v41 = vpop.eup %3964  ;;  %v2853_v57 = vadd.f32 1.0, %v3963_v15  ;;  %v2794_v53 = vmul.f32 0.5, %v2762_v31  ;;  %v2793_v19 = vmul.f32 0.5, %v2761_v56 }
 0x446   : > { %v2852_v8 = vadd.f32 1.0, %v3965_v41  ;;  %v2702_v2 = vpop.xlane.xlu1 %2701  ;;  %v2700_v18 = vpop.xlane.xlu0 %2699 }
 0x447   : > { %v2885_v17 = vmul.f32 0.5, %v2853_v57  ;;  %3972 = vtanh.f32 %v2794_v53  ;;  %v2764_v43 = vadd.f32 %v4975_v23, %v2702_v2  ;;  %v2763_v3 = vadd.f32 %v4975_v23, %v2700_v18 }
 0x448   : > { %v2884_v6 = vmul.f32 0.5, %v2852_v8  ;;  %3974 = vtanh.f32 %v2793_v19 }
 0x449   : > { %v3967_v50 = vpop.eup %3966  ;;  %2918 = vst.msk [vmem:[%s4988_s18 + $0x8] sm:$0xff] %vm2916_vm1, %v2885_v17  ;;  %v2796_v9 = vmul.f32 0.5, %v2764_v43  ;;  %v2795_v28 = vmul.f32 0.5, %v2763_v3 }
 0x44a   : > { %2917 = vst.msk [vmem:[%s4988_s18] sm:$0xff] %vm2916_vm1, %v2884_v6  ;;  %v2855_v61 = vadd.f32 1.0, %v3967_v50  ;;  %v2704_v51 = vpop.xlane.xlu0 %2703 }
 0x44b   : > { %v2706_v25 = vpop.xlane.xlu1 %2705  ;;  %3976 = vtanh.f32 %v2796_v9  ;;  %v2765_v5 = vadd.f32 %v4975_v23, %v2704_v51 }
 0x44c   : > { %v2766_v4 = vadd.f32 %v4975_v23, %v2706_v25  ;;  %v2887_v32 = vmul.f32 0.5, %v2855_v61  ;;  %3978 = vtanh.f32 %v2795_v28 }
 0x44d   : > { %v3969_v33 = vpop.eup %3968  ;;  %v2797_v13 = vmul.f32 0.5, %v2765_v5 }
 0x44e   : > { %v2798_v12 = vmul.f32 0.5, %v2766_v4  ;;  %v3971_v26 = vpop.eup %3970  ;;  %2920 = vst.msk [vmem:[%s4988_s18 + $0x18] sm:$0xff] %vm2916_vm1, %v2887_v32  ;;  %v2856_v46 = vadd.f32 1.0, %v3969_v33  ;;  %v2708_v27 = vpop.xlane.xlu0 %2707 }
 0x44f   : > { %v2710_v47 = vpop.xlane.xlu1 %2709  ;;  %v2854_v37 = vadd.f32 1.0, %v3971_v26  ;;  %v2767_v30 = vadd.f32 %v4975_v23, %v2708_v27 }
 0x450   : > { %3980 = vtanh.f32 %v2798_v12  ;;  %v2768_v14 = vadd.f32 %v4975_v23, %v2710_v47  ;;  %v2888_v55 = vmul.f32 0.5, %v2856_v46 }
 0x451   : > { %3982 = vtanh.f32 %v2797_v13  ;;  %v3973_v40 = vpop.eup %3972  ;;  %v2886_v48 = vmul.f32 0.5, %v2854_v37  ;;  %v2799_v62 = vmul.f32 0.5, %v2767_v30 }
 0x452   : > { %v2800_v49 = vmul.f32 0.5, %v2768_v14  ;;  %v3975_v21 = vpop.eup %3974  ;;  %2921 = vst.msk [vmem:[%s4988_s18 + $0x20] sm:$0xff] %vm2916_vm1, %v2888_v55  ;;  %v2858_v22 = vadd.f32 1.0, %v3973_v40  ;;  %v2712_v24 = vpop.xlane.xlu0 %2711 }
 0x453   : > { %v2714_v16 = vpop.xlane.xlu1 %2713  ;;  %2919 = vst.msk [vmem:[%s4988_s18 + $0x10] sm:$0xff] %vm2916_vm1, %v2886_v48  ;;  %v2857_v52 = vadd.f32 1.0, %v3975_v21  ;;  %v2769_v60 = vadd.f32 %v4975_v23, %v2712_v24 }
 0x454   : > { %3984 = vtanh.f32 %v2800_v49  ;;  %v2770_v10 = vadd.f32 %v4975_v23, %v2714_v16  ;;  %v2890_v42 = vmul.f32 0.5, %v2858_v22 }
 0x455   : > { %3986 = vtanh.f32 %v2799_v62  ;;  %v3977_v38 = vpop.eup %3976  ;;  %v2889_v20 = vmul.f32 0.5, %v2857_v52  ;;  %v2801_v11 = vmul.f32 0.5, %v2769_v60 }
 0x456   : > { %v2802_v63 = vmul.f32 0.5, %v2770_v10  ;;  %v3979_v39 = vpop.eup %3978  ;;  %2923 = vst.msk [vmem:[%s4988_s18 + $0x30] sm:$0xff] %vm2916_vm1, %v2890_v42  ;;  %v2860_v29 = vadd.f32 1.0, %v3977_v38  ;;  %v2716_v58 = vpop.xlane.xlu0 %2715 }
 0x457   : > { %v2718_v7 = vpop.xlane.xlu1 %2717  ;;  %2922 = vst.msk [vmem:[%s4988_s18 + $0x28] sm:$0xff] %vm2916_vm1, %v2889_v20  ;;  %v2859_v36 = vadd.f32 1.0, %v3979_v39  ;;  %v2771_v59 = vadd.f32 %v4975_v23, %v2716_v58 }
 0x458   : > { %3988 = vtanh.f32 %v2802_v63  ;;  %v2772_v34 = vadd.f32 %v4975_v23, %v2718_v7  ;;  %v2892_v45 = vmul.f32 0.5, %v2860_v29 }
 0x459   : > { %3990 = vtanh.f32 %v2801_v11  ;;  %v2891_v44 = vmul.f32 0.5, %v2859_v36  ;;  %v2803_v54 = vmul.f32 0.5, %v2771_v59 }
 0x45a   : > { %v3981_v0 = vpop.eup %3980  ;;  %v2804_v1 = vmul.f32 0.5, %v2772_v34  ;;  %2925 = vst.msk [vmem:[%s4988_s18 + $0x40] sm:$0xff] %vm2916_vm1, %v2892_v45  ;;  %v2720_v15 = vpop.xlane.xlu0 %2719 }
 0x45b   : > { %v3983_v35 = vpop.eup %3982  ;;  %v2862_v31 = vadd.f32 1.0, %v3981_v0  ;;  %v2722_v56 = vpop.xlane.xlu1 %2721  ;;  %2924 = vst.msk [vmem:[%s4988_s18 + $0x38] sm:$0xff] %vm2916_vm1, %v2891_v44  ;;  %v2773_v53 = vadd.f32 %v4975_v23, %v2720_v15 }
 0x45c   : > { %v2861_v41 = vadd.f32 1.0, %v3983_v35  ;;  %3992 = vtanh.f32 %v2804_v1  ;;  %v2774_v57 = vadd.f32 %v4975_v23, %v2722_v56 }
 0x45d   : > { %v2894_v19 = vmul.f32 0.5, %v2862_v31  ;;  %3994 = vtanh.f32 %v2803_v54  ;;  %v2805_v17 = vmul.f32 0.5, %v2773_v53 }
 0x45e   : > { %v3985_v8 = vpop.eup %3984  ;;  %v2893_v2 = vmul.f32 0.5, %v2861_v41  ;;  %v2806_v18 = vmul.f32 0.5, %v2774_v57  ;;  %v2724_v6 = vpop.xlane.xlu0 %2723 }
 0x45f   : > { %v3987_v43 = vpop.eup %3986  ;;  %2927 = vst.msk [vmem:[%s4988_s18 + $0x50] sm:$0xff] %vm2916_vm1, %v2894_v19  ;;  %v2864_v3 = vadd.f32 1.0, %v3985_v8  ;;  %v2775_v9 = vadd.f32 %v4975_v23, %v2724_v6  ;;  %v2726_v28 = vpop.xlane.xlu1 %2725 }
 0x460   : > { %2926 = vst.msk [vmem:[%s4988_s18 + $0x48] sm:$0xff] %vm2916_vm1, %v2893_v2  ;;  %v2863_v50 = vadd.f32 1.0, %v3987_v43  ;;  %3996 = vtanh.f32 %v2806_v18  ;;  %v2776_v25 = vadd.f32 %v4975_v23, %v2726_v28 }
 0x461   : > { %v2896_v61 = vmul.f32 0.5, %v2864_v3  ;;  %3998 = vtanh.f32 %v2805_v17  ;;  %v2807_v5 = vmul.f32 0.5, %v2775_v9 }
 0x462   : > { %v3989_v51 = vpop.eup %3988  ;;  %v2895_v4 = vmul.f32 0.5, %v2863_v50  ;;  %v2808_v12 = vmul.f32 0.5, %v2776_v25  ;;  %v2728_v13 = vpop.xlane.xlu0 %2727 }
 0x463   : > { %v3991_v32 = vpop.eup %3990  ;;  %2929 = vst.msk [vmem:[%s4988_s18 + $0x60] sm:$0xff] %vm2916_vm1, %v2896_v61  ;;  %v2866_v33 = vadd.f32 1.0, %v3989_v51  ;;  %4000 = vtanh.f32 %v2807_v5  ;;  %v2777_v46 = vadd.f32 %v4975_v23, %v2728_v13 }
 0x464   : > { %2928 = vst.msk [vmem:[%s4988_s18 + $0x58] sm:$0xff] %vm2916_vm1, %v2895_v4  ;;  %v2865_v26 = vadd.f32 1.0, %v3991_v32  ;;  %4002 = vtanh.f32 %v2808_v12 }
 0x465   : > { %v2898_v47 = vmul.f32 0.5, %v2866_v33  ;;  %v2809_v14 = vmul.f32 0.5, %v2777_v46 }
 0x466   : > { %v3993_v27 = vpop.eup %3992  ;;  %v2897_v37 = vmul.f32 0.5, %v2865_v26 }
 0x467   : > { %v3995_v30 = vpop.eup %3994  ;;  %2931 = vst.msk [vmem:[%s4988_s18 + $0x70] sm:$0xff] %vm2916_vm1, %v2898_v47  ;;  %v2868_v55 = vadd.f32 1.0, %v3993_v27  ;;  %4004 = vtanh.f32 %v2809_v14 }
 0x468   : > { %2930 = vst.msk [vmem:[%s4988_s18 + $0x68] sm:$0xff] %vm2916_vm1, %v2897_v37  ;;  %v2867_v40 = vadd.f32 1.0, %v3995_v30 }
 0x469   : > { %v2900_v48 = vmul.f32 0.5, %v2868_v55 }
 0x46a   : > { %v3997_v49 = vpop.eup %3996  ;;  %v2899_v62 = vmul.f32 0.5, %v2867_v40  ;;  %v2732_v16 = vpop.xlane.xlu0 %2731 }
 0x46b   : > { %v3999_v21 = vpop.eup %3998  ;;  %2933 = vst.msk [vmem:[%s4988_s18 + $0x80] sm:$0xff] %vm2916_vm1, %v2900_v48  ;;  %v2870_v22 = vadd.f32 1.0, %v3997_v49  ;;  %v2779_v52 = vadd.f32 %v4975_v23, %v2732_v16  ;;  %v2730_v10 = vpop.xlane.xlu1 %2729 }
 0x46c   : > { %2932 = vst.msk [vmem:[%s4988_s18 + $0x78] sm:$0xff] %vm2916_vm1, %v2899_v62  ;;  %v2869_v24 = vadd.f32 1.0, %v3999_v21  ;;  %v2778_v42 = vadd.f32 %v4975_v23, %v2730_v10 }
 0x46d   : > { %v2902_v60 = vmul.f32 0.5, %v2870_v22  ;;  %v4001_v38 = vpop.eup %4000  ;;  %v2811_v63 = vmul.f32 0.5, %v2779_v52 }
 0x46e   : > { %v2901_v20 = vmul.f32 0.5, %v2869_v24  ;;  %v4003_v11 = vpop.eup %4002  ;;  %v2871_v39 = vadd.f32 1.0, %v4001_v38  ;;  %v2810_v29 = vmul.f32 0.5, %v2778_v42 }
 0x46f   : > { %2935 = vst.msk [vmem:[%s4988_s18 + $0x90] sm:$0xff] %vm2916_vm1, %v2902_v60  ;;  %v2872_v7 = vadd.f32 1.0, %v4003_v11  ;;  %4006 = vtanh.f32 %v2811_v63 }
 0x470   : > { %2934 = vst.msk [vmem:[%s4988_s18 + $0x88] sm:$0xff] %vm2916_vm1, %v2901_v20  ;;  %v2903_v58 = vmul.f32 0.5, %v2871_v39  ;;  %4008 = vtanh.f32 %v2810_v29 }
 0x471   : > { %v4005_v36 = vpop.eup %4004  ;;  %v2904_v34 = vmul.f32 0.5, %v2872_v7 }
 0x472   : > { %2936 = vst.msk [vmem:[%s4988_s18 + $0x98] sm:$0xff] %vm2916_vm1, %v2903_v58  ;;  %v2873_v59 = vadd.f32 1.0, %v4005_v36 }
 0x473   : > { %2937 = vst.msk [vmem:[%s4988_s18 + $0xa0] sm:$0xff] %vm2916_vm1, %v2904_v34 }
 0x474   : > { %v2905_v45 = vmul.f32 0.5, %v2873_v59 }
 0x476   : > { %2938 = vst.msk [vmem:[%s4988_s18 + $0xa8] sm:$0xff] %vm2916_vm1, %v2905_v45  ;;  %v2736_v0 = vpop.xlane.xlu0 %2735 }
 0x477   : > { %v2781_v44 = vadd.f32 %v4975_v23, %v2736_v0  ;;  %v2734_v1 = vpop.xlane.xlu1 %2733 }
 0x478   : > { %v2780_v54 = vadd.f32 %v4975_v23, %v2734_v1 }
 0x479   : > { %v4007_v35 = vpop.eup %4006  ;;  %v2813_v31 = vmul.f32 0.5, %v2781_v44 }
 0x47a   : > { %v4009_v56 = vpop.eup %4008  ;;  %v2875_v15 = vadd.f32 1.0, %v4007_v35  ;;  %v2812_v41 = vmul.f32 0.5, %v2780_v54 }
 0x47b   : > { %v2874_v57 = vadd.f32 1.0, %v4009_v56  ;;  %4010 = vtanh.f32 %v2813_v31 }
 0x47c   : > { %v2907_v53 = vmul.f32 0.5, %v2875_v15  ;;  %4012 = vtanh.f32 %v2812_v41 }
 0x47d   : > { %v2906_v19 = vmul.f32 0.5, %v2874_v57 }
 0x47e   : > { %2940 = vst.msk [vmem:[%s4988_s18 + $0xb8] sm:$0xff] %vm2916_vm1, %v2907_v53 }
 0x47f   : > { %2939 = vst.msk [vmem:[%s4988_s18 + $0xb0] sm:$0xff] %vm2916_vm1, %v2906_v19 }
 0x482   : > { %v2740_v8 = vpop.xlane.xlu0 %2739 }
 0x483   : > { %v2783_v2 = vadd.f32 %v4975_v23, %v2740_v8  ;;  %v2738_v18 = vpop.xlane.xlu1 %2737 }
 0x484   : > { %v2782_v17 = vadd.f32 %v4975_v23, %v2738_v18 }
 0x485   : > { %v4011_v43 = vpop.eup %4010  ;;  %v2815_v3 = vmul.f32 0.5, %v2783_v2 }
 0x486   : > { %v4013_v6 = vpop.eup %4012  ;;  %v2877_v50 = vadd.f32 1.0, %v4011_v43  ;;  %v2814_v9 = vmul.f32 0.5, %v2782_v17 }
 0x487   : > { %v2876_v28 = vadd.f32 1.0, %v4013_v6  ;;  %4014 = vtanh.f32 %v2815_v3 }
 0x488   : > { %v2909_v61 = vmul.f32 0.5, %v2877_v50  ;;  %4016 = vtanh.f32 %v2814_v9 }
 0x489   : > { %v2908_v25 = vmul.f32 0.5, %v2876_v28 }
 0x48a   : > { %2942 = vst.msk [vmem:[%s4988_s18 + $0xc8] sm:$0xff] %vm2916_vm1, %v2909_v61 }
 0x48b   : > { %2941 = vst.msk [vmem:[%s4988_s18 + $0xc0] sm:$0xff] %vm2916_vm1, %v2908_v25 }
 0x48e   : > { %v2744_v51 = vpop.xlane.xlu0 %2743 }
 0x48f   : > { %v2785_v4 = vadd.f32 %v4975_v23, %v2744_v51  ;;  %v2742_v5 = vpop.xlane.xlu1 %2741 }
 0x490   : > { %v2784_v32 = vadd.f32 %v4975_v23, %v2742_v5 }
 0x491   : > { %v4015_v33 = vpop.eup %4014  ;;  %v2817_v12 = vmul.f32 0.5, %v2785_v4 }
 0x492   : > { %v4017_v13 = vpop.eup %4016  ;;  %v2879_v26 = vadd.f32 1.0, %v4015_v33  ;;  %v2816_v46 = vmul.f32 0.5, %v2784_v32 }
 0x493   : > { %v2878_v47 = vadd.f32 1.0, %v4017_v13  ;;  %4018 = vtanh.f32 %v2817_v12 }
 0x494   : > { %v2911_v27 = vmul.f32 0.5, %v2879_v26  ;;  %4020 = vtanh.f32 %v2816_v46 }
 0x495   : > { %v2910_v37 = vmul.f32 0.5, %v2878_v47 }
 0x496   : > { %2944 = vst.msk [vmem:[%s4988_s18 + $0xd8] sm:$0xff] %vm2916_vm1, %v2911_v27 }
 0x497   : > { %2943 = vst.msk [vmem:[%s4988_s18 + $0xd0] sm:$0xff] %vm2916_vm1, %v2910_v37 }
 0x499   : > { %v2748_v14 = vpop.xlane.xlu0 %2747 }
 0x49a   : > { %v2787_v30 = vadd.f32 %v4975_v23, %v2748_v14  ;;  %v2746_v55 = vpop.xlane.xlu1 %2745 }
 0x49b   : > { %v2786_v40 = vadd.f32 %v4975_v23, %v2746_v55 }
 0x49c   : > { %v2819_v48 = vmul.f32 0.5, %v2787_v30 }
 0x49d   : > { %v2818_v49 = vmul.f32 0.5, %v2786_v40  ;;  %v4019_v62 = vpop.eup %4018 }
 0x49e   : > { %4022 = vtanh.f32 %v2819_v48  ;;  %v4021_v21 = vpop.eup %4020  ;;  %v2881_v22 = vadd.f32 1.0, %v4019_v62 }
 0x49f   : > { %4024 = vtanh.f32 %v2818_v49  ;;  %v2880_v16 = vadd.f32 1.0, %v4021_v21 }
 0x4a0   : > { %v2913_v24 = vmul.f32 0.5, %v2881_v22 }
 0x4a1   : > { %v2912_v52 = vmul.f32 0.5, %v2880_v16 }
 0x4a2   : > { %2946 = vst.msk [vmem:[%s4988_s18 + $0xe8] sm:$0xff] %vm2916_vm1, %v2913_v24 }
 0x4a3   : > { %2945 = vst.msk [vmem:[%s4988_s18 + $0xe0] sm:$0xff] %vm2916_vm1, %v2912_v52 }
 0x4a8   : > { %v4023_v10 = vpop.eup %4022 }
 0x4a9   : > { %v4025_v60 = vpop.eup %4024  ;;  %v2883_v42 = vadd.f32 1.0, %v4023_v10 }
 0x4aa   : > { %v2882_v23 = vadd.f32 1.0, %v4025_v60 }
 0x4ab   : > { %v2915_v38 = vmul.f32 0.5, %v2883_v42 }
 0x4ac   : > { %v2914_v20 = vmul.f32 0.5, %v2882_v23 }
 0x4ad   : > { %2948 = vst.msk [vmem:[%s4988_s18 + $0xf8] sm:$0xff] %vm2916_vm1, %v2915_v38 }
 0x4ae   : > { %2947 = vst.msk [vmem:[%s4988_s18 + $0xf0] sm:$0xff] %vm2916_vm1, %v2914_v20 }
 0x4af PF: > { %s29_s26 = sadd.s32 1, %s4032_s26  }
 0x4b0   : > { %p26_p4 = scmp.ge.s32.totalorder %s29_s26, 4  }
 0x4b2   :  { %28 = sbr.rel (!%p26_p4) target bundleno = 3 (0x3), region = 127 }

</bundles_post_ra>
